<compile_context>
chip_gen: v7x
topology: tpu7x:2x2x1
jax: 0.10.0
libtpu: 0.0.40
codegen_flags: <defaults>
</compile_context>

<pallas_src>
import functools
import math

import numpy as np
import jax
import jax.numpy as jnp
from jax.experimental import pallas as pl
from jax.experimental.pallas import tpu as pltpu


_VMEM_LIMIT = 56 * 1024 * 1024   # stays under v7x's 64 MiB physical VMEM


# --------------------------------------------------------------------------- #
# MAttention kernel (one branch per pallas_call, grid = (batch, head))
# --------------------------------------------------------------------------- #
def _make_mattention_kernel(num_heads, head_dim, scale):
    def kernel(x_ref, wq_ref, wk_ref, wv_ref, wpt_ref, bp_ref, o_ref, acc_ref):
        # x_ref:   (1, N, C)        token view (raw reshape of (C, H, W))
        # wq/wk/wv_ref: (1, hd, C)  per-head projection rows
        # wpt_ref: (C, C) = proj_weight^T;  bp_ref: (1, C)
        # o_ref:   (1, N, C) = proj(rgb_a) in token layout
        # acc_ref: (C, N) f32 scratch holding rgb_a^T, one head slice per step
        h = pl.program_id(1)
        x = x_ref[0]                                                   # (N, C)
        trans_rhs = (((1,), (1,)), ((), ()))
        # Per-head q/k/v already transposed: (hd, N), queries lane-dense.
        # qk scale folded into q (hd*N muls instead of N^2).
        qh = jax.lax.dot_general(wq_ref[0], x, trans_rhs,
                                 preferred_element_type=jnp.float32) * scale
        kh = jax.lax.dot_general(wk_ref[0], x, trans_rhs,
                                 preferred_element_type=jnp.float32)
        vh = jax.lax.dot_general(wv_ref[0], x, trans_rhs,
                                 preferred_element_type=jnp.float32)

        # logits^T: rows = key index (sublane), cols = query index (lane).
        logits_t = jax.lax.dot_general(kh, qh, (((0,), (0,)), ((), ())),
                                       preferred_element_type=jnp.float32)  # (N, N)
        m = jnp.max(logits_t, axis=0, keepdims=True)                        # (1, N)
        p = jnp.exp(logits_t - m)
        denom = jnp.sum(p, axis=0, keepdims=True)                           # (1, N)
        # out_h^T[d, i] = sum_j v[j, d] * p[j, i]; normalization deferred to
        # the (hd, N) output (EUP reciprocal, broadcast over the hd sublanes).
        oh = jnp.dot(vh, p, preferred_element_type=jnp.float32)             # (hd, N)
        lo = pl.multiple_of(h * head_dim, head_dim)
        acc_ref[pl.ds(lo, head_dim), :] = oh * pl.reciprocal(denom, approx=True)

        @pl.when(h == num_heads - 1)
        def _():
            # proj emitted directly in (N, C) token layout so the wrapper's
            # reshape to the (C, H, W) image view is a free raw reshape.
            proj = jax.lax.dot_general(acc_ref[...], wpt_ref[...],
                                       (((0,), (0,)), ((), ())),
                                       preferred_element_type=jnp.float32)   # (N, C)
            o_ref[0] = (proj + bp_ref[...]).astype(o_ref.dtype)

    return kernel


def _mattention_pallas(x_nc, wq, wk, wv, wpt, bp, num_heads):
    # x_nc: (B, N, C); wq/wk/wv: (NH, hd, C); wpt: (C, C); bp: (1, C)
    B, N, C = x_nc.shape
    head_dim = C // num_heads
    scale = float(head_dim) ** -0.5
    kernel = _make_mattention_kernel(num_heads, head_dim, scale)

    return pl.pallas_call(
        kernel,
        out_shape=jax.ShapeDtypeStruct((B, N, C), x_nc.dtype),
        grid_spec=pltpu.PrefetchScalarGridSpec(
            num_scalar_prefetch=0,
            grid=(B, num_heads),
            in_specs=[
                pl.BlockSpec((1, N, C), lambda b, h: (b, 0, 0)),
                pl.BlockSpec((1, head_dim, C), lambda b, h: (h, 0, 0)),
                pl.BlockSpec((1, head_dim, C), lambda b, h: (h, 0, 0)),
                pl.BlockSpec((1, head_dim, C), lambda b, h: (h, 0, 0)),
                pl.BlockSpec((C, C), lambda b, h: (0, 0)),
                pl.BlockSpec((1, C), lambda b, h: (0, 0)),
            ],
            out_specs=pl.BlockSpec((1, N, C), lambda b, h: (b, 0, 0)),
            scratch_shapes=[pltpu.VMEM((C, N), jnp.float32)],
        ),
        compiler_params=pltpu.CompilerParams(
            dimension_semantics=("parallel", "arbitrary"),
            vmem_limit_bytes=_VMEM_LIMIT),
    )(x_nc, wq, wk, wv, wpt, bp)


# --------------------------------------------------------------------------- #
# Fused CAM / conv_out kernel (grid = (batch, spatial tiles))
# --------------------------------------------------------------------------- #
def _fuse_kernel(x_ref, y_ref, msx_ref, msy_ref,
                 wcx_ref, bcx_ref, wcy_ref, bcy_ref, pool_ref,
                 wox_ref, sx_ref, tx_ref, woy_ref, sy_ref, ty_ref,
                 out_ref, cls_ref, pcx_ref, pcy_ref):
    j = pl.program_id(1)
    x = x_ref[0]                                                       # (C, tn)
    y = y_ref[0]

    # --- cls branch: 1x1 conv (+bias) -> adaptive-avg-pool accumulation -----
    cam_x = jnp.dot(wcx_ref[...], x, preferred_element_type=jnp.float32) + bcx_ref[...]
    cam_y = jnp.dot(wcy_ref[...], y, preferred_element_type=jnp.float32) + bcy_ref[...]
    pool = pool_ref[...]                                               # (tn, NB)

    @pl.when(j == 0)
    def _():
        pcx_ref[...] = jnp.zeros_like(pcx_ref)
        pcy_ref[...] = jnp.zeros_like(pcy_ref)

    pcx_ref[...] += jnp.dot(cam_x, pool, preferred_element_type=jnp.float32)
    pcy_ref[...] += jnp.dot(cam_y, pool, preferred_element_type=jnp.float32)

    @pl.when(j == pl.num_programs(1) - 1)
    def _():
        cls_ref[0] = (jax.nn.sigmoid(pcx_ref[...]) +
                      jax.nn.sigmoid(pcy_ref[...])).astype(cls_ref.dtype)

    # --- conv_out branch: 1x1 conv (no bias) + folded eval-BN + ReLU + add ---
    ox = jnp.dot(wox_ref[...], msx_ref[0], preferred_element_type=jnp.float32)
    ox = jnp.maximum(ox * sx_ref[...] + tx_ref[...], 0.0)
    oy = jnp.dot(woy_ref[...], msy_ref[0], preferred_element_type=jnp.float32)
    oy = jnp.maximum(oy * sy_ref[...] + ty_ref[...], 0.0)
    out_ref[0] = (ox + oy).astype(out_ref.dtype)


def _pick_spatial_tile(n, target=512):
    """Largest spatial tile <= target that divides N (falls back to N)."""
    if n <= target:
        return n
    for t in (512, 256, 128):
        if n % t == 0:
            return t
    return n


def _fuse_pallas(x_flat, y_flat, msx, msy,
                 wcam_x, bcam_x, wcam_y, bcam_y, pool_mat,
                 wout_x, bns_x, bnt_x, wout_y, bns_y, bnt_y):
    B, C, N = x_flat.shape
    NC = wcam_x.shape[0]
    NB = pool_mat.shape[1]
    tn = _pick_spatial_tile(N)
    nt = N // tn

    spec_act = pl.BlockSpec((1, C, tn), lambda b, j: (b, 0, j))
    spec_cam_w = pl.BlockSpec((NC, C), lambda b, j: (0, 0))
    spec_cam_b = pl.BlockSpec((NC, 1), lambda b, j: (0, 0))
    spec_pool = pl.BlockSpec((tn, NB), lambda b, j: (j, 0))
    spec_cc = pl.BlockSpec((C, C), lambda b, j: (0, 0))
    spec_c1 = pl.BlockSpec((C, 1), lambda b, j: (0, 0))

    return pl.pallas_call(
        _fuse_kernel,
        out_shape=(jax.ShapeDtypeStruct((B, C, N), x_flat.dtype),
                   jax.ShapeDtypeStruct((B, NC, NB), x_flat.dtype)),
        grid_spec=pltpu.PrefetchScalarGridSpec(
            num_scalar_prefetch=0,
            grid=(B, nt),
            in_specs=[spec_act, spec_act, spec_act, spec_act,
                      spec_cam_w, spec_cam_b, spec_cam_w, spec_cam_b, spec_pool,
                      spec_cc, spec_c1, spec_c1, spec_cc, spec_c1, spec_c1],
            out_specs=(pl.BlockSpec((1, C, tn), lambda b, j: (b, 0, j)),
                       pl.BlockSpec((1, NC, NB), lambda b, j: (b, 0, 0))),
            scratch_shapes=[pltpu.VMEM((NC, NB), jnp.float32),
                            pltpu.VMEM((NC, NB), jnp.float32)],
        ),
        compiler_params=pltpu.CompilerParams(
            dimension_semantics=("parallel", "arbitrary"),
            vmem_limit_bytes=_VMEM_LIMIT),
    )(x_flat, y_flat, msx, msy,
      wcam_x, bcam_x, wcam_y, bcam_y, pool_mat,
      wout_x, bns_x, bnt_x, wout_y, bns_y, bnt_y)


# --------------------------------------------------------------------------- #
# Host-side helpers / wrapper
# --------------------------------------------------------------------------- #
def _adaptive_avg_pool_matrix(H, W, bin_size):
    """(H*W, bh*bw) matrix P so that cam_flat @ P == AdaptiveAvgPool2d(bin_size)."""
    bh, bw = bin_size
    P = np.zeros((H * W, bh * bw), dtype=np.float32)
    for i in range(bh):
        h0, h1 = math.floor(i * H / bh), math.ceil((i + 1) * H / bh)
        for j in range(bw):
            w0, w1 = math.floor(j * W / bw), math.ceil((j + 1) * W / bw)
            val = 1.0 / ((h1 - h0) * (w1 - w0))
            for hh in range(h0, h1):
                P[hh * W + w0:hh * W + w1, i * bw + j] = val
    return jnp.asarray(P)


def caam_wby_forward(x, y, params, *, bin_size, num_heads=4, bn_eps=1e-5):
    """Pallas forward of CAAM_WBY. x, y: (B, feat_in, H, W) float32."""
    B, C, H, W = x.shape
    N = H * W
    p = params
    num_classes = p['cam_w'].shape[0]
    hd = C // num_heads

    # ---------------- MAttention (one pallas_call per branch) ----------------
    # PyTorch token view rgb = x.reshape(B, H*W, C) is a raw reshape -> free.
    x_nc = x.reshape(B, N, C)
    y_nc = y.reshape(B, N, C)

    def split_heads(w):   # (3C, C) -> (3, NH, hd, C) qkv / head weight slices
        return w.reshape(3, num_heads, hd, C)

    wq_x = split_heads(p['msa_qkv_r'])[0]
    wk_x = split_heads(p['msa_qkv_f'])[1]
    wv_x = split_heads(p['msa_qkv_f'])[2]
    wq_y = split_heads(p['msa_y_qkv_r'])[0]
    wk_y = split_heads(p['msa_y_qkv_f'])[1]
    wv_y = split_heads(p['msa_y_qkv_f'])[2]

    msx_nc = _mattention_pallas(x_nc, wq_x, wk_x, wv_x,
                                p['msa_proj_w'].T, p['msa_proj_b'][None, :],
                                num_heads)                              # (B, N, C)
    msy_nc = _mattention_pallas(y_nc, wq_y, wk_y, wv_y,
                                p['msa_y_proj_w'].T, p['msa_y_proj_b'][None, :],
                                num_heads)

    # rgb_a (B, N, C) --raw reshape--> (B, C, H, W) channel view, flattened: free.
    msx = msx_nc.reshape(B, C, N)
    msy = msy_nc.reshape(B, C, N)

    # ---------------- CAM + conv_out + cross-branch fusion -------------------
    pool_mat = _adaptive_avg_pool_matrix(H, W, bin_size)
    sx = p['bn_x_gamma'] / jnp.sqrt(p['bn_x_var'] + bn_eps)
    tx = p['bn_x_beta'] - p['bn_x_mean'] * sx
    sy = p['bn_y_gamma'] / jnp.sqrt(p['bn_y_var'] + bn_eps)
    ty = p['bn_y_beta'] - p['bn_y_mean'] * sy

    out_flat, cls = _fuse_pallas(
        x.reshape(B, C, N), y.reshape(B, C, N), msx, msy,
        p['cam_w'], p['cam_b'][:, None], p['cam_y_w'], p['cam_y_b'][:, None],
        pool_mat,
        p['conv_out_w'], sx[:, None], tx[:, None],
        p['conv_out_y_w'], sy[:, None], ty[:, None])

    out = out_flat.reshape(B, C, H, W)
    cls_score = cls.reshape(B, num_classes, bin_size[0], bin_size[1])
    return out, cls_score


# --------------------------------------------------------------------------- #
# Pure-JAX reference (mirrors the PyTorch module op-by-op)
# --------------------------------------------------------------------------- #
_P = jax.lax.Precision.HIGHEST


def _mattention_ref(x, w_qkv_r, w_qkv_f, w_proj, b_proj, num_heads):
    B, C, H, W = x.shape
    N = H * W
    hd = C // num_heads
    rgb = x.reshape(B, N, C)
    qkv_r = jnp.einsum('bnc,oc->bno', rgb, w_qkv_r, precision=_P)
    qkv_r = qkv_r.reshape(B, N, 3, num_heads, hd).transpose(2, 0, 3, 1, 4)
    qr = qkv_r[0]
    qkv_f = jnp.einsum('bnc,oc->bno', rgb, w_qkv_f, precision=_P)
    qkv_f = qkv_f.reshape(B, N, 3, num_heads, hd).transpose(2, 0, 3, 1, 4)
    kg, vg = qkv_f[1], qkv_f[2]
    attn = jax.nn.softmax(
        jnp.einsum('bhnd,bhmd->bhnm', qr, kg, precision=_P) * (hd ** -0.5), axis=-1)
    rgb_a = jnp.einsum('bhnm,bhmd->bhnd', attn, vg, precision=_P)
    rgb_a = rgb_a.transpose(0, 2, 1, 3).reshape(B, N, C)
    rgb_a = jnp.einsum('bnc,oc->bno', rgb_a, w_proj, precision=_P) + b_proj
    return rgb_a.reshape(B, C, H, W)


def _reference(x, y, p, bin_size, num_heads, bn_eps=1e-5):
    B, C, H, W = x.shape
    bh, bw = bin_size

    def branch(inp, wcam, bcam, wqkv_r, wqkv_f, wproj, bproj, wout, g, beta, mean, var):
        cam = jnp.einsum('oc,bchw->bohw', wcam, inp, precision=_P) + bcam[None, :, None, None]
        nc = cam.shape[1]
        pooled = cam.reshape(B, nc, bh, H // bh, bw, W // bw).mean(axis=(3, 5))
        cls = jax.nn.sigmoid(pooled)
        ms = _mattention_ref(inp, wqkv_r, wqkv_f, wproj, bproj, num_heads)
        o = jnp.einsum('oc,bchw->bohw', wout, ms, precision=_P)
        s = g / jnp.sqrt(var + bn_eps)
        t = beta - mean * s
        o = jnp.maximum(o * s[None, :, None, None] + t[None, :, None, None], 0.0)
        return o, cls

    ox, cx = branch(x, p['cam_w'], p['cam_b'], p['msa_qkv_r'], p['msa_qkv_f'],
                    p['msa_proj_w'], p['msa_proj_b'], p['conv_out_w'],
                    p['bn_x_gamma'], p['bn_x_beta'], p['bn_x_mean'], p['bn_x_var'])
    oy, cy = branch(y, p['cam_y_w'], p['cam_y_b'], p['msa_y_qkv_r'], p['msa_y_qkv_f'],
                    p['msa_y_proj_w'], p['msa_y_proj_b'], p['conv_out_y_w'],
                    p['bn_y_gamma'], p['bn_y_beta'], p['bn_y_mean'], p['bn_y_var'])
    return ox + oy, cx + cy


def _init_params(key, feat_in, num_classes):
    C = feat_in
    ks = jax.random.split(key, 22)
    bC = 1.0 / float(np.sqrt(C))

    def u(k, shape, b):
        return jax.random.uniform(k, shape, jnp.float32, -b, b)

    return {
        'cam_w':        u(ks[0], (num_classes, C), bC),
        'cam_b':        u(ks[1], (num_classes,), bC),
        'cam_y_w':      u(ks[2], (num_classes, C), bC),
        'cam_y_b':      u(ks[3], (num_classes,), bC),
        'msa_qkv_r':    u(ks[4], (3 * C, C), bC),
        'msa_qkv_f':    u(ks[5], (3 * C, C), bC),
        'msa_proj_w':   u(ks[6], (C, C), bC),
        'msa_proj_b':   u(ks[7], (C,), bC),
        'msa_y_qkv_r':  u(ks[8], (3 * C, C), bC),
        'msa_y_qkv_f':  u(ks[9], (3 * C, C), bC),
        'msa_y_proj_w': u(ks[10], (C, C), bC),
        'msa_y_proj_b': u(ks[11], (C,), bC),
        'conv_out_w':   u(ks[12], (C, C), bC),
        'conv_out_y_w': u(ks[13], (C, C), bC),
        # eval-mode BatchNorm2d parameters / running stats
        'bn_x_gamma': jax.random.uniform(ks[14], (C,), jnp.float32, 0.5, 1.5),
        'bn_x_beta':  u(ks[15], (C,), 0.5),
        'bn_x_mean':  u(ks[16], (C,), 0.2),
        'bn_x_var':   jax.random.uniform(ks[17], (C,), jnp.float32, 0.5, 1.5),
        'bn_y_gamma': jax.random.uniform(ks[18], (C,), jnp.float32, 0.5, 1.5),
        'bn_y_beta':  u(ks[19], (C,), 0.5),
        'bn_y_mean':  u(ks[20], (C,), 0.2),
        'bn_y_var':   jax.random.uniform(ks[21], (C,), jnp.float32, 0.5, 1.5),
    }


if __name__ == "__main__":
    key = jax.random.PRNGKey(0)
    kx, ky, kp = jax.random.split(key, 3)

    # Small shapes consistent with the module: feat_in divisible by num_heads=4.
    B, C, H, W = 2, 32, 16, 16
    num_classes = 8
    num_heads = 4
    bin_size = (2, 2)

    x = jax.random.normal(kx, (B, C, H, W), dtype=jnp.float32)
    y = jax.random.normal(ky, (B, C, H, W), dtype=jnp.float32)
    params = _init_params(kp, C, num_classes)

    fwd = jax.jit(functools.partial(caam_wby_forward,
                                    bin_size=bin_size, num_heads=num_heads))
    out, cls_score = fwd(x, y, params)
    out = jax.block_until_ready(out)
    cls_score = jax.block_until_ready(cls_score)

    ref_out, ref_cls = _reference(x, y, params, bin_size, num_heads)
    ref_out = jax.block_until_ready(ref_out)
    ref_cls = jax.block_until_ready(ref_cls)

    assert out.shape == (B, C, H, W)
    assert cls_score.shape == (B, num_classes, bin_size[0], bin_size[1])
    assert jnp.allclose(out, ref_out, atol=2e-3, rtol=2e-3), "out mismatch vs reference"
    assert jnp.allclose(cls_score, ref_cls, atol=2e-3, rtol=2e-3), "cls_score mismatch vs reference"

    print("KERNEL_OK")
</pallas_src>

<mosaic_0001>
module attributes {stable_mosaic.version = 11 : i64} {
  func.func @kernel(%arg0: i32, %arg1: i32, %arg2: memref<1x256x32xf32, #tpu.memory_space<vmem>>, %arg3: memref<1x8x32xf32, #tpu.memory_space<vmem>>, %arg4: memref<1x8x32xf32, #tpu.memory_space<vmem>>, %arg5: memref<1x8x32xf32, #tpu.memory_space<vmem>>, %arg6: memref<32x32xf32, #tpu.memory_space<vmem>>, %arg7: memref<1x32xf32, #tpu.memory_space<vmem>>, %arg8: memref<1x256x32xf32, #tpu.memory_space<vmem>>, %arg9: memref<32x256xf32, #tpu.memory_space<vmem>>) attributes {dimension_semantics = [#tpu.dimension_semantics<parallel>, #tpu.dimension_semantics<arbitrary>], iteration_bounds = array<i64: 2, 4>, scalar_prefetch = 0 : i64, scratch_operands = 1 : i64, tpu.core_type = #tpu.core_type<tc>, window_params = [{transform_indices = @transform_0, window_bounds = array<i64: 1, 256, 32>}, {transform_indices = @transform_1, window_bounds = array<i64: 1, 8, 32>}, {transform_indices = @transform_2, window_bounds = array<i64: 1, 8, 32>}, {transform_indices = @transform_3, window_bounds = array<i64: 1, 8, 32>}, {pipeline_mode = #tpu.pipeline_mode<synchronous>, transform_indices = @transform_4, window_bounds = array<i64: 32, 32>}, {pipeline_mode = #tpu.pipeline_mode<synchronous>, transform_indices = @transform_5, window_bounds = array<i64: 1, 32>}, {transform_indices = @transform_6, window_bounds = array<i64: 1, 256, 32>}]} {
    %c0 = arith.constant 0 : index
    %c0_0 = arith.constant 0 : index
    %c0_1 = arith.constant 0 : index
    %0 = vector.load %arg2[%c0, %c0_0, %c0_1] : memref<1x256x32xf32, #tpu.memory_space<vmem>>, vector<1x256x32xf32>
    %1 = vector.shape_cast %0 : vector<1x256x32xf32> to vector<256x32xf32>
    %c0_2 = arith.constant 0 : index
    %c0_3 = arith.constant 0 : index
    %c0_4 = arith.constant 0 : index
    %2 = vector.load %arg3[%c0_2, %c0_3, %c0_4] : memref<1x8x32xf32, #tpu.memory_space<vmem>>, vector<1x8x32xf32>
    %3 = vector.shape_cast %2 : vector<1x8x32xf32> to vector<8x32xf32>
    %cst = arith.constant dense<0.000000e+00> : vector<8x256xf32>
    %4 = tpu.matmul %3, %1, %cst {dimension_numbers = #tpu.dot_dimension_numbers<[1], [1], [0], [0], [0, 0, 1, 0], [], []>} : vector<8x32xf32>, vector<256x32xf32>, vector<8x256xf32> -> vector<8x256xf32>
    %cst_5 = arith.constant 0.353553385 : f32
    %5 = vector.broadcast %cst_5 : f32 to vector<8x256xf32>
    %6 = arith.mulf %4, %5 : vector<8x256xf32>
    %c0_6 = arith.constant 0 : index
    %c0_7 = arith.constant 0 : index
    %c0_8 = arith.constant 0 : index
    %7 = vector.load %arg4[%c0_6, %c0_7, %c0_8] : memref<1x8x32xf32, #tpu.memory_space<vmem>>, vector<1x8x32xf32>
    %8 = vector.shape_cast %7 : vector<1x8x32xf32> to vector<8x32xf32>
    %cst_9 = arith.constant dense<0.000000e+00> : vector<8x256xf32>
    %9 = tpu.matmul %8, %1, %cst_9 {dimension_numbers = #tpu.dot_dimension_numbers<[1], [1], [0], [0], [0, 0, 1, 0], [], []>} : vector<8x32xf32>, vector<256x32xf32>, vector<8x256xf32> -> vector<8x256xf32>
    %c0_10 = arith.constant 0 : index
    %c0_11 = arith.constant 0 : index
    %c0_12 = arith.constant 0 : index
    %10 = vector.load %arg5[%c0_10, %c0_11, %c0_12] : memref<1x8x32xf32, #tpu.memory_space<vmem>>, vector<1x8x32xf32>
    %11 = vector.shape_cast %10 : vector<1x8x32xf32> to vector<8x32xf32>
    %cst_13 = arith.constant dense<0.000000e+00> : vector<8x256xf32>
    %12 = tpu.matmul %11, %1, %cst_13 {dimension_numbers = #tpu.dot_dimension_numbers<[1], [1], [0], [0], [0, 0, 1, 0], [], []>} : vector<8x32xf32>, vector<256x32xf32>, vector<8x256xf32> -> vector<8x256xf32>
    %cst_14 = arith.constant dense<0.000000e+00> : vector<256x256xf32>
    %13 = tpu.matmul %9, %6, %cst_14 {dimension_numbers = #tpu.dot_dimension_numbers<[0], [0], [1], [1], [0, 1, 1, 1], [], []>} : vector<8x256xf32>, vector<8x256xf32>, vector<256x256xf32> -> vector<256x256xf32>
    %cst_15 = arith.constant dense<0xFF800000> : vector<256xf32>
    %14 = vector.multi_reduction <maximumf>, %13, %cst_15 [0] : vector<256x256xf32> to vector<256xf32>
    %15 = vector.shape_cast %14 : vector<256xf32> to vector<1x256xf32>
    %16 = vector.broadcast %15 : vector<1x256xf32> to vector<256x256xf32>
    %17 = arith.subf %13, %16 : vector<256x256xf32>
    %18 = math.exp %17 : vector<256x256xf32>
    %cst_16 = arith.constant dense<0.000000e+00> : vector<256xf32>
    %19 = vector.multi_reduction <add>, %18, %cst_16 [0] : vector<256x256xf32> to vector<256xf32>
    %20 = vector.shape_cast %19 : vector<256xf32> to vector<1x256xf32>
    %cst_17 = arith.constant dense<0.000000e+00> : vector<8x256xf32>
    %21 = tpu.matmul %12, %18, %cst_17 {dimension_numbers = #tpu.dot_dimension_numbers<[1], [0], [0], [1], [0, 0, 1, 1], [], []>} : vector<8x256xf32>, vector<256x256xf32>, vector<8x256xf32> -> vector<8x256xf32>
    %c8_i32 = arith.constant 8 : i32
    %22 = arith.muli %arg1, %c8_i32 : i32
    %23 = tpu.assume_multiple %22, 8 : i32
    %24 = tpu.reciprocal %20 {approx = true} : vector<1x256xf32> -> vector<1x256xf32>
    %25 = vector.broadcast %24 : vector<1x256xf32> to vector<8x256xf32>
    %26 = arith.mulf %21, %25 : vector<8x256xf32>
    %27 = arith.index_cast %23 : i32 to index
    %c0_18 = arith.constant 0 : index
    %28 = vector.load %arg9[%27, %c0_18] : memref<32x256xf32, #tpu.memory_space<vmem>>, vector<8x256xf32>
    tpu.vector_store %arg9[%27, %c0_18], %26 {strides = array<i32>} : memref<32x256xf32, #tpu.memory_space<vmem>>, vector<8x256xf32>,
    %c3_i32 = arith.constant 3 : i32
    %29 = arith.cmpi eq, %arg1, %c3_i32 : i32
    %30 = arith.extui %29 : i1 to i32
    %c0_i32 = arith.constant 0 : i32
    %31 = arith.cmpi ne, %30, %c0_i32 : i32
    scf.if %31 {
      %c0_19 = arith.constant 0 : index
      %c0_20 = arith.constant 0 : index
      %32 = vector.load %arg9[%c0_19, %c0_20] : memref<32x256xf32, #tpu.memory_space<vmem>>, vector<32x256xf32>
      %c0_21 = arith.constant 0 : index
      %c0_22 = arith.constant 0 : index
      %33 = vector.load %arg6[%c0_21, %c0_22] : memref<32x32xf32, #tpu.memory_space<vmem>>, vector<32x32xf32>
      %cst_23 = arith.constant dense<0.000000e+00> : vector<256x32xf32>
      %34 = tpu.matmul %32, %33, %cst_23 {dimension_numbers = #tpu.dot_dimension_numbers<[0], [0], [1], [1], [0, 1, 1, 1], [], []>} : vector<32x256xf32>, vector<32x32xf32>, vector<256x32xf32> -> vector<256x32xf32>
      %c0_24 = arith.constant 0 : index
      %c0_25 = arith.constant 0 : index
      %35 = vector.load %arg7[%c0_24, %c0_25] : memref<1x32xf32, #tpu.memory_space<vmem>>, vector<1x32xf32>
      %36 = vector.broadcast %35 : vector<1x32xf32> to vector<256x32xf32>
      %37 = arith.addf %34, %36 : vector<256x32xf32>
      %c0_26 = arith.constant 0 : index
      %c0_27 = arith.constant 0 : index
      %c0_28 = arith.constant 0 : index
      %38 = vector.load %arg8[%c0_26, %c0_27, %c0_28] : memref<1x256x32xf32, #tpu.memory_space<vmem>>, vector<1x256x32xf32>
      %39 = vector.shape_cast %38 : vector<1x256x32xf32> to vector<256x32xf32>
      %40 = vector.shape_cast %37 : vector<256x32xf32> to vector<1x256x32xf32>
      tpu.vector_store %arg8[%c0_26, %c0_27, %c0_28], %40 {strides = array<i32>} : memref<1x256x32xf32, #tpu.memory_space<vmem>>, vector<1x256x32xf32>,
    } else {
    }
    return
  }
  func.func @transform_0(%arg0: i32, %arg1: i32) -> (i32, i32, i32) {
    %c0_i32 = arith.constant 0 : i32
    %c0_i32_0 = arith.constant 0 : i32
    %c0_i32_1 = arith.constant 0 : i32
    return %arg0, %c0_i32, %c0_i32_0 : i32, i32, i32
  }
  func.func @transform_1(%arg0: i32, %arg1: i32) -> (i32, i32, i32) {
    %c0_i32 = arith.constant 0 : i32
    %c0_i32_0 = arith.constant 0 : i32
    %c0_i32_1 = arith.constant 0 : i32
    return %arg1, %c0_i32, %c0_i32_0 : i32, i32, i32
  }
  func.func @transform_2(%arg0: i32, %arg1: i32) -> (i32, i32, i32) {
    %c0_i32 = arith.constant 0 : i32
    %c0_i32_0 = arith.constant 0 : i32
    %c0_i32_1 = arith.constant 0 : i32
    return %arg1, %c0_i32, %c0_i32_0 : i32, i32, i32
  }
  func.func @transform_3(%arg0: i32, %arg1: i32) -> (i32, i32, i32) {
    %c0_i32 = arith.constant 0 : i32
    %c0_i32_0 = arith.constant 0 : i32
    %c0_i32_1 = arith.constant 0 : i32
    return %arg1, %c0_i32, %c0_i32_0 : i32, i32, i32
  }
  func.func @transform_4(%arg0: i32, %arg1: i32) -> (i32, i32) {
    %c0_i32 = arith.constant 0 : i32
    %c0_i32_0 = arith.constant 0 : i32
    %c0_i32_1 = arith.constant 0 : i32
    return %c0_i32, %c0_i32_0 : i32, i32
  }
  func.func @transform_5(%arg0: i32, %arg1: i32) -> (i32, i32) {
    %c0_i32 = arith.constant 0 : i32
    %c0_i32_0 = arith.constant 0 : i32
    %c0_i32_1 = arith.constant 0 : i32
    return %c0_i32, %c0_i32_0 : i32, i32
  }
  func.func @transform_6(%arg0: i32, %arg1: i32) -> (i32, i32, i32) {
    %c0_i32 = arith.constant 0 : i32
    %c0_i32_0 = arith.constant 0 : i32
    %c0_i32_1 = arith.constant 0 : i32
    return %arg0, %c0_i32, %c0_i32_0 : i32, i32, i32
  }
}

module attributes {stable_mosaic.version = 11 : i64} {
  func.func @_fuse_kernel(%arg0: i32, %arg1: i32, %arg2: memref<1x32x256xf32, #tpu.memory_space<vmem>>, %arg3: memref<1x32x256xf32, #tpu.memory_space<vmem>>, %arg4: memref<1x32x256xf32, #tpu.memory_space<vmem>>, %arg5: memref<1x32x256xf32, #tpu.memory_space<vmem>>, %arg6: memref<8x32xf32, #tpu.memory_space<vmem>>, %arg7: memref<8x1xf32, #tpu.memory_space<vmem>>, %arg8: memref<8x32xf32, #tpu.memory_space<vmem>>, %arg9: memref<8x1xf32, #tpu.memory_space<vmem>>, %arg10: memref<256x4xf32, #tpu.memory_space<vmem>>, %arg11: memref<32x32xf32, #tpu.memory_space<vmem>>, %arg12: memref<32x1xf32, #tpu.memory_space<vmem>>, %arg13: memref<32x1xf32, #tpu.memory_space<vmem>>, %arg14: memref<32x32xf32, #tpu.memory_space<vmem>>, %arg15: memref<32x1xf32, #tpu.memory_space<vmem>>, %arg16: memref<32x1xf32, #tpu.memory_space<vmem>>, %arg17: memref<1x32x256xf32, #tpu.memory_space<vmem>>, %arg18: memref<1x8x4xf32, #tpu.memory_space<vmem>>, %arg19: memref<8x4xf32, #tpu.memory_space<vmem>>, %arg20: memref<8x4xf32, #tpu.memory_space<vmem>>) attributes {dimension_semantics = [#tpu.dimension_semantics<parallel>, #tpu.dimension_semantics<arbitrary>], iteration_bounds = array<i64: 2, 1>, scalar_prefetch = 0 : i64, scratch_operands = 2 : i64, tpu.core_type = #tpu.core_type<tc>, window_params = [{transform_indices = @transform_0, window_bounds = array<i64: 1, 32, 256>}, {transform_indices = @transform_1, window_bounds = array<i64: 1, 32, 256>}, {transform_indices = @transform_2, window_bounds = array<i64: 1, 32, 256>}, {transform_indices = @transform_3, window_bounds = array<i64: 1, 32, 256>}, {pipeline_mode = #tpu.pipeline_mode<synchronous>, transform_indices = @transform_4, window_bounds = array<i64: 8, 32>}, {pipeline_mode = #tpu.pipeline_mode<synchronous>, transform_indices = @transform_5, window_bounds = array<i64: 8, 1>}, {pipeline_mode = #tpu.pipeline_mode<synchronous>, transform_indices = @transform_6, window_bounds = array<i64: 8, 32>}, {pipeline_mode = #tpu.pipeline_mode<synchronous>, transform_indices = @transform_7, window_bounds = array<i64: 8, 1>}, {transform_indices = @transform_8, window_bounds = array<i64: 256, 4>}, {pipeline_mode = #tpu.pipeline_mode<synchronous>, transform_indices = @transform_9, window_bounds = array<i64: 32, 32>}, {pipeline_mode = #tpu.pipeline_mode<synchronous>, transform_indices = @transform_10, window_bounds = array<i64: 32, 1>}, {pipeline_mode = #tpu.pipeline_mode<synchronous>, transform_indices = @transform_11, window_bounds = array<i64: 32, 1>}, {pipeline_mode = #tpu.pipeline_mode<synchronous>, transform_indices = @transform_12, window_bounds = array<i64: 32, 32>}, {pipeline_mode = #tpu.pipeline_mode<synchronous>, transform_indices = @transform_13, window_bounds = array<i64: 32, 1>}, {pipeline_mode = #tpu.pipeline_mode<synchronous>, transform_indices = @transform_14, window_bounds = array<i64: 32, 1>}, {transform_indices = @transform_15, window_bounds = array<i64: 1, 32, 256>}, {transform_indices = @transform_16, window_bounds = array<i64: 1, 8, 4>}]} {
    %c0 = arith.constant 0 : index
    %c0_0 = arith.constant 0 : index
    %c0_1 = arith.constant 0 : index
    %0 = vector.load %arg2[%c0, %c0_0, %c0_1] : memref<1x32x256xf32, #tpu.memory_space<vmem>>, vector<1x32x256xf32>
    %1 = vector.shape_cast %0 : vector<1x32x256xf32> to vector<32x256xf32>
    %c0_2 = arith.constant 0 : index
    %c0_3 = arith.constant 0 : index
    %c0_4 = arith.constant 0 : index
    %2 = vector.load %arg3[%c0_2, %c0_3, %c0_4] : memref<1x32x256xf32, #tpu.memory_space<vmem>>, vector<1x32x256xf32>
    %3 = vector.shape_cast %2 : vector<1x32x256xf32> to vector<32x256xf32>
    %c0_5 = arith.constant 0 : index
    %c0_6 = arith.constant 0 : index
    %4 = vector.load %arg6[%c0_5, %c0_6] : memref<8x32xf32, #tpu.memory_space<vmem>>, vector<8x32xf32>
    %cst = arith.constant dense<0.000000e+00> : vector<8x256xf32>
    %5 = tpu.matmul %4, %1, %cst {dimension_numbers = #tpu.dot_dimension_numbers<[1], [0], [0], [1], [0, 0, 1, 1], [], []>} : vector<8x32xf32>, vector<32x256xf32>, vector<8x256xf32> -> vector<8x256xf32>
    %c0_7 = arith.constant 0 : index
    %c0_8 = arith.constant 0 : index
    %6 = vector.load %arg7[%c0_7, %c0_8] : memref<8x1xf32, #tpu.memory_space<vmem>>, vector<8x1xf32>
    %7 = vector.broadcast %6 : vector<8x1xf32> to vector<8x256xf32>
    %8 = arith.addf %5, %7 : vector<8x256xf32>
    %c0_9 = arith.constant 0 : index
    %c0_10 = arith.constant 0 : index
    %9 = vector.load %arg8[%c0_9, %c0_10] : memref<8x32xf32, #tpu.memory_space<vmem>>, vector<8x32xf32>
    %cst_11 = arith.constant dense<0.000000e+00> : vector<8x256xf32>
    %10 = tpu.matmul %9, %3, %cst_11 {dimension_numbers = #tpu.dot_dimension_numbers<[1], [0], [0], [1], [0, 0, 1, 1], [], []>} : vector<8x32xf32>, vector<32x256xf32>, vector<8x256xf32> -> vector<8x256xf32>
    %c0_12 = arith.constant 0 : index
    %c0_13 = arith.constant 0 : index
    %11 = vector.load %arg9[%c0_12, %c0_13] : memref<8x1xf32, #tpu.memory_space<vmem>>, vector<8x1xf32>
    %12 = vector.broadcast %11 : vector<8x1xf32> to vector<8x256xf32>
    %13 = arith.addf %10, %12 : vector<8x256xf32>
    %c0_14 = arith.constant 0 : index
    %c0_15 = arith.constant 0 : index
    %14 = vector.load %arg10[%c0_14, %c0_15] : memref<256x4xf32, #tpu.memory_space<vmem>>, vector<256x4xf32>
    %c0_i32 = arith.constant 0 : i32
    %15 = arith.cmpi eq, %arg1, %c0_i32 : i32
    %16 = arith.extui %15 : i1 to i32
    %c0_i32_16 = arith.constant 0 : i32
    %17 = arith.cmpi ne, %16, %c0_i32_16 : i32
    scf.if %17 {
      %cst_54 = arith.constant 0.000000e+00 : f32
      %57 = vector.broadcast %cst_54 : f32 to vector<8x4xf32>
      %c0_55 = arith.constant 0 : index
      %c0_56 = arith.constant 0 : index
      %58 = vector.load %arg19[%c0_55, %c0_56] : memref<8x4xf32, #tpu.memory_space<vmem>>, vector<8x4xf32>
      tpu.vector_store %arg19[%c0_55, %c0_56], %57 {strides = array<i32>} : memref<8x4xf32, #tpu.memory_space<vmem>>, vector<8x4xf32>,
      %cst_57 = arith.constant 0.000000e+00 : f32
      %59 = vector.broadcast %cst_57 : f32 to vector<8x4xf32>
      %c0_58 = arith.constant 0 : index
      %c0_59 = arith.constant 0 : index
      %60 = vector.load %arg20[%c0_58, %c0_59] : memref<8x4xf32, #tpu.memory_space<vmem>>, vector<8x4xf32>
      tpu.vector_store %arg20[%c0_58, %c0_59], %59 {strides = array<i32>} : memref<8x4xf32, #tpu.memory_space<vmem>>, vector<8x4xf32>,
    } else {
    }
    %c0_17 = arith.constant 0 : index
    %c0_18 = arith.constant 0 : index
    %18 = vector.load %arg19[%c0_17, %c0_18] : memref<8x4xf32, #tpu.memory_space<vmem>>, vector<8x4xf32>
    %cst_19 = arith.constant dense<0.000000e+00> : vector<8x4xf32>
    %19 = tpu.matmul %8, %14, %cst_19 {dimension_numbers = #tpu.dot_dimension_numbers<[1], [0], [0], [1], [0, 0, 1, 1], [], []>} : vector<8x256xf32>, vector<256x4xf32>, vector<8x4xf32> -> vector<8x4xf32>
    %20 = arith.addf %18, %19 : vector<8x4xf32>
    %c0_20 = arith.constant 0 : index
    %c0_21 = arith.constant 0 : index
    %21 = vector.load %arg19[%c0_20, %c0_21] : memref<8x4xf32, #tpu.memory_space<vmem>>, vector<8x4xf32>
    tpu.vector_store %arg19[%c0_20, %c0_21], %20 {strides = array<i32>} : memref<8x4xf32, #tpu.memory_space<vmem>>, vector<8x4xf32>,
    %c0_22 = arith.constant 0 : index
    %c0_23 = arith.constant 0 : index
    %22 = vector.load %arg20[%c0_22, %c0_23] : memref<8x4xf32, #tpu.memory_space<vmem>>, vector<8x4xf32>
    %cst_24 = arith.constant dense<0.000000e+00> : vector<8x4xf32>
    %23 = tpu.matmul %13, %14, %cst_24 {dimension_numbers = #tpu.dot_dimension_numbers<[1], [0], [0], [1], [0, 0, 1, 1], [], []>} : vector<8x256xf32>, vector<256x4xf32>, vector<8x4xf32> -> vector<8x4xf32>
    %24 = arith.addf %22, %23 : vector<8x4xf32>
    %c0_25 = arith.constant 0 : index
    %c0_26 = arith.constant 0 : index
    %25 = vector.load %arg20[%c0_25, %c0_26] : memref<8x4xf32, #tpu.memory_space<vmem>>, vector<8x4xf32>
    tpu.vector_store %arg20[%c0_25, %c0_26], %24 {strides = array<i32>} : memref<8x4xf32, #tpu.memory_space<vmem>>, vector<8x4xf32>,
    %c0_i32_27 = arith.constant 0 : i32
    %26 = arith.cmpi eq, %arg1, %c0_i32_27 : i32
    %27 = arith.extui %26 : i1 to i32
    %c0_i32_28 = arith.constant 0 : i32
    %28 = arith.cmpi ne, %27, %c0_i32_28 : i32
    scf.if %28 {
      %c0_54 = arith.constant 0 : index
      %c0_55 = arith.constant 0 : index
      %57 = vector.load %arg19[%c0_54, %c0_55] : memref<8x4xf32, #tpu.memory_space<vmem>>, vector<8x4xf32>
      %58 = arith.negf %57 : vector<8x4xf32>
      %59 = math.exp %58 : vector<8x4xf32>
      %cst_56 = arith.constant 1.000000e+00 : f32
      %60 = vector.broadcast %cst_56 : f32 to vector<8x4xf32>
      %61 = arith.addf %60, %59 : vector<8x4xf32>
      %62 = arith.divf %60, %61 : vector<8x4xf32>
      %c0_57 = arith.constant 0 : index
      %c0_58 = arith.constant 0 : index
      %63 = vector.load %arg20[%c0_57, %c0_58] : memref<8x4xf32, #tpu.memory_space<vmem>>, vector<8x4xf32>
      %64 = arith.negf %63 : vector<8x4xf32>
      %65 = math.exp %64 : vector<8x4xf32>
      %cst_59 = arith.constant 1.000000e+00 : f32
      %66 = vector.broadcast %cst_59 : f32 to vector<8x4xf32>
      %67 = arith.addf %66, %65 : vector<8x4xf32>
      %68 = arith.divf %66, %67 : vector<8x4xf32>
      %69 = arith.addf %62, %68 : vector<8x4xf32>
      %c0_60 = arith.constant 0 : index
      %c0_61 = arith.constant 0 : index
      %c0_62 = arith.constant 0 : index
      %70 = vector.load %arg18[%c0_60, %c0_61, %c0_62] : memref<1x8x4xf32, #tpu.memory_space<vmem>>, vector<1x8x4xf32>
      %71 = vector.shape_cast %70 : vector<1x8x4xf32> to vector<8x4xf32>
      %72 = vector.shape_cast %69 : vector<8x4xf32> to vector<1x8x4xf32>
      tpu.vector_store %arg18[%c0_60, %c0_61, %c0_62], %72 {strides = array<i32>} : memref<1x8x4xf32, #tpu.memory_space<vmem>>, vector<1x8x4xf32>,
    } else {
    }
    %c0_29 = arith.constant 0 : index
    %c0_30 = arith.constant 0 : index
    %29 = vector.load %arg11[%c0_29, %c0_30] : memref<32x32xf32, #tpu.memory_space<vmem>>, vector<32x32xf32>
    %c0_31 = arith.constant 0 : index
    %c0_32 = arith.constant 0 : index
    %c0_33 = arith.constant 0 : index
    %30 = vector.load %arg4[%c0_31, %c0_32, %c0_33] : memref<1x32x256xf32, #tpu.memory_space<vmem>>, vector<1x32x256xf32>
    %31 = vector.shape_cast %30 : vector<1x32x256xf32> to vector<32x256xf32>
    %cst_34 = arith.constant dense<0.000000e+00> : vector<32x256xf32>
    %32 = tpu.matmul %29, %31, %cst_34 {dimension_numbers = #tpu.dot_dimension_numbers<[1], [0], [0], [1], [0, 0, 1, 1], [], []>} : vector<32x32xf32>, vector<32x256xf32>, vector<32x256xf32> -> vector<32x256xf32>
    %c0_35 = arith.constant 0 : index
    %c0_36 = arith.constant 0 : index
    %33 = vector.load %arg12[%c0_35, %c0_36] : memref<32x1xf32, #tpu.memory_space<vmem>>, vector<32x1xf32>
    %34 = vector.broadcast %33 : vector<32x1xf32> to vector<32x256xf32>
    %35 = arith.mulf %32, %34 : vector<32x256xf32>
    %c0_37 = arith.constant 0 : index
    %c0_38 = arith.constant 0 : index
    %36 = vector.load %arg13[%c0_37, %c0_38] : memref<32x1xf32, #tpu.memory_space<vmem>>, vector<32x1xf32>
    %37 = vector.broadcast %36 : vector<32x1xf32> to vector<32x256xf32>
    %38 = arith.addf %35, %37 : vector<32x256xf32>
    %cst_39 = arith.constant 0.000000e+00 : f32
    %39 = vector.broadcast %cst_39 : f32 to vector<32x256xf32>
    %40 = arith.maximumf %38, %39 : vector<32x256xf32>
    %c0_40 = arith.constant 0 : index
    %c0_41 = arith.constant 0 : index
    %41 = vector.load %arg14[%c0_40, %c0_41] : memref<32x32xf32, #tpu.memory_space<vmem>>, vector<32x32xf32>
    %c0_42 = arith.constant 0 : index
    %c0_43 = arith.constant 0 : index
    %c0_44 = arith.constant 0 : index
    %42 = vector.load %arg5[%c0_42, %c0_43, %c0_44] : memref<1x32x256xf32, #tpu.memory_space<vmem>>, vector<1x32x256xf32>
    %43 = vector.shape_cast %42 : vector<1x32x256xf32> to vector<32x256xf32>
    %cst_45 = arith.constant dense<0.000000e+00> : vector<32x256xf32>
    %44 = tpu.matmul %41, %43, %cst_45 {dimension_numbers = #tpu.dot_dimension_numbers<[1], [0], [0], [1], [0, 0, 1, 1], [], []>} : vector<32x32xf32>, vector<32x256xf32>, vector<32x256xf32> -> vector<32x256xf32>
    %c0_46 = arith.constant 0 : index
    %c0_47 = arith.constant 0 : index
    %45 = vector.load %arg15[%c0_46, %c0_47] : memref<32x1xf32, #tpu.memory_space<vmem>>, vector<32x1xf32>
    %46 = vector.broadcast %45 : vector<32x1xf32> to vector<32x256xf32>
    %47 = arith.mulf %44, %46 : vector<32x256xf32>
    %c0_48 = arith.constant 0 : index
    %c0_49 = arith.constant 0 : index
    %48 = vector.load %arg16[%c0_48, %c0_49] : memref<32x1xf32, #tpu.memory_space<vmem>>, vector<32x1xf32>
    %49 = vector.broadcast %48 : vector<32x1xf32> to vector<32x256xf32>
    %50 = arith.addf %47, %49 : vector<32x256xf32>
    %cst_50 = arith.constant 0.000000e+00 : f32
    %51 = vector.broadcast %cst_50 : f32 to vector<32x256xf32>
    %52 = arith.maximumf %50, %51 : vector<32x256xf32>
    %53 = arith.addf %40, %52 : vector<32x256xf32>
    %c0_51 = arith.constant 0 : index
    %c0_52 = arith.constant 0 : index
    %c0_53 = arith.constant 0 : index
    %54 = vector.load %arg17[%c0_51, %c0_52, %c0_53] : memref<1x32x256xf32, #tpu.memory_space<vmem>>, vector<1x32x256xf32>
    %55 = vector.shape_cast %54 : vector<1x32x256xf32> to vector<32x256xf32>
    %56 = vector.shape_cast %53 : vector<32x256xf32> to vector<1x32x256xf32>
    tpu.vector_store %arg17[%c0_51, %c0_52, %c0_53], %56 {strides = array<i32>} : memref<1x32x256xf32, #tpu.memory_space<vmem>>, vector<1x32x256xf32>,
    return
  }
  func.func @transform_0(%arg0: i32, %arg1: i32) -> (i32, i32, i32) {
    %c0_i32 = arith.constant 0 : i32
    %c0_i32_0 = arith.constant 0 : i32
    return %arg0, %c0_i32, %arg1 : i32, i32, i32
  }
  func.func @transform_1(%arg0: i32, %arg1: i32) -> (i32, i32, i32) {
    %c0_i32 = arith.constant 0 : i32
    %c0_i32_0 = arith.constant 0 : i32
    return %arg0, %c0_i32, %arg1 : i32, i32, i32
  }
  func.func @transform_2(%arg0: i32, %arg1: i32) -> (i32, i32, i32) {
    %c0_i32 = arith.constant 0 : i32
    %c0_i32_0 = arith.constant 0 : i32
    return %arg0, %c0_i32, %arg1 : i32, i32, i32
  }
  func.func @transform_3(%arg0: i32, %arg1: i32) -> (i32, i32, i32) {
    %c0_i32 = arith.constant 0 : i32
    %c0_i32_0 = arith.constant 0 : i32
    return %arg0, %c0_i32, %arg1 : i32, i32, i32
  }
  func.func @transform_4(%arg0: i32, %arg1: i32) -> (i32, i32) {
    %c0_i32 = arith.constant 0 : i32
    %c0_i32_0 = arith.constant 0 : i32
    %c0_i32_1 = arith.constant 0 : i32
    return %c0_i32, %c0_i32_0 : i32, i32
  }
  func.func @transform_5(%arg0: i32, %arg1: i32) -> (i32, i32) {
    %c0_i32 = arith.constant 0 : i32
    %c0_i32_0 = arith.constant 0 : i32
    %c0_i32_1 = arith.constant 0 : i32
    return %c0_i32, %c0_i32_0 : i32, i32
  }
  func.func @transform_6(%arg0: i32, %arg1: i32) -> (i32, i32) {
    %c0_i32 = arith.constant 0 : i32
    %c0_i32_0 = arith.constant 0 : i32
    %c0_i32_1 = arith.constant 0 : i32
    return %c0_i32, %c0_i32_0 : i32, i32
  }
  func.func @transform_7(%arg0: i32, %arg1: i32) -> (i32, i32) {
    %c0_i32 = arith.constant 0 : i32
    %c0_i32_0 = arith.constant 0 : i32
    %c0_i32_1 = arith.constant 0 : i32
    return %c0_i32, %c0_i32_0 : i32, i32
  }
  func.func @transform_8(%arg0: i32, %arg1: i32) -> (i32, i32) {
    %c0_i32 = arith.constant 0 : i32
    %c0_i32_0 = arith.constant 0 : i32
    return %arg1, %c0_i32 : i32, i32
  }
  func.func @transform_9(%arg0: i32, %arg1: i32) -> (i32, i32) {
    %c0_i32 = arith.constant 0 : i32
    %c0_i32_0 = arith.constant 0 : i32
    %c0_i32_1 = arith.constant 0 : i32
    return %c0_i32, %c0_i32_0 : i32, i32
  }
  func.func @transform_10(%arg0: i32, %arg1: i32) -> (i32, i32) {
    %c0_i32 = arith.constant 0 : i32
    %c0_i32_0 = arith.constant 0 : i32
    %c0_i32_1 = arith.constant 0 : i32
    return %c0_i32, %c0_i32_0 : i32, i32
  }
  func.func @transform_11(%arg0: i32, %arg1: i32) -> (i32, i32) {
    %c0_i32 = arith.constant 0 : i32
    %c0_i32_0 = arith.constant 0 : i32
    %c0_i32_1 = arith.constant 0 : i32
    return %c0_i32, %c0_i32_0 : i32, i32
  }
  func.func @transform_12(%arg0: i32, %arg1: i32) -> (i32, i32) {
    %c0_i32 = arith.constant 0 : i32
    %c0_i32_0 = arith.constant 0 : i32
    %c0_i32_1 = arith.constant 0 : i32
    return %c0_i32, %c0_i32_0 : i32, i32
  }
  func.func @transform_13(%arg0: i32, %arg1: i32) -> (i32, i32) {
    %c0_i32 = arith.constant 0 : i32
    %c0_i32_0 = arith.constant 0 : i32
    %c0_i32_1 = arith.constant 0 : i32
    return %c0_i32, %c0_i32_0 : i32, i32
  }
  func.func @transform_14(%arg0: i32, %arg1: i32) -> (i32, i32) {
    %c0_i32 = arith.constant 0 : i32
    %c0_i32_0 = arith.constant 0 : i32
    %c0_i32_1 = arith.constant 0 : i32
    return %c0_i32, %c0_i32_0 : i32, i32
  }
  func.func @transform_15(%arg0: i32, %arg1: i32) -> (i32, i32, i32) {
    %c0_i32 = arith.constant 0 : i32
    %c0_i32_0 = arith.constant 0 : i32
    return %arg0, %c0_i32, %arg1 : i32, i32, i32
  }
  func.func @transform_16(%arg0: i32, %arg1: i32) -> (i32, i32, i32) {
    %c0_i32 = arith.constant 0 : i32
    %c0_i32_0 = arith.constant 0 : i32
    %c0_i32_1 = arith.constant 0 : i32
    return %arg0, %c0_i32, %c0_i32_0 : i32, i32, i32
  }
}

</mosaic_0001>

<bundles_post_ra>
// kernel: caam_wby_forward.5
= control target key start
LH: loop header
LB: loop body
LE: loop exit
PB: predicated region body
PF: predicated region fallthrough
CT: control target
= control target key end

     0   :  { %s2008_s21 = smov 0   ;;  %s2010_s22 = smov 0   ;;  %s2325_s0 = inlined_call_operand.vmem [shape: f32[2,32,256], index: 0, kind: input, shape index: {}]   ;;  %s2326_s1 = inlined_call_operand.vmem [shape: f32[2,32,256], index: 1, kind: input, shape index: {}]   ;;  %s2327_s2 = inlined_call_operand.vmem [shape: f32[2,32,256], index: 2, kind: input, shape index: {}]   ;;  %s2328_s3 = inlined_call_operand.vmem [shape: f32[2,32,256], index: 3, kind: input, shape index: {}]   ;;  %s2329_s4 = inlined_call_operand.vmem [shape: f32[8,32], index: 4, kind: input, shape index: {}]   ;;  %s2330_s5 = inlined_call_operand.vmem [shape: f32[8,1], index: 5, kind: input, shape index: {}]   ;;  %s2331_s6 = inlined_call_operand.vmem [shape: f32[8,32], index: 6, kind: input, shape index: {}]   ;;  %s2332_s7 = inlined_call_operand.vmem [shape: f32[8,1], index: 7, kind: input, shape index: {}]   ;;  %s2333_s8 = inlined_call_operand.vmem [shape: f32[256,4], index: 8, kind: input, shape index: {}]   ;;  %s2334_s9 = inlined_call_operand.vmem [shape: f32[32,32], index: 9, kind: input, shape index: {}]   ;;  %s2335_s10 = inlined_call_operand.vmem [shape: f32[32,1], index: 10, kind: input, shape index: {}]   ;;  %s2336_s11 = inlined_call_operand.vmem [shape: f32[32,1], index: 11, kind: input, shape index: {}]   ;;  %s2337_s12 = inlined_call_operand.vmem [shape: f32[32,32], index: 12, kind: input, shape index: {}]   ;;  %s2338_s13 = inlined_call_operand.vmem [shape: f32[32,1], index: 13, kind: input, shape index: {}]   ;;  %s2339_s14 = inlined_call_operand.vmem [shape: f32[32,1], index: 14, kind: input, shape index: {}]   ;;  %s2340_s15 = inlined_call_operand.vmem [shape: f32[2,32,256], index: 15, kind: output, shape index: {0}]   ;;  %s2341_s16 = inlined_call_operand.vmem [shape: f32[2,8,4], index: 16, kind: output, shape index: {1}]  }
   0x1   :  { %2342 = sst [smem:[#allocation4_spill]] %s2325_s0  ;;  %s2012_s23 = smov 0  }
   0x2   :  { %2343 = sst [smem:[#allocation5_spill]] %s2330_s5 }
   0x3 LB: > { %s39_s24 = sadd.s32 1, %s1915_s22  ;;  %p1664_p0 = scmp.ge.s32.totalorder %s1919_s23, 1  ;;  %s1919_s23 = sphi %s2012_s23, %s27_s23   ;;  %s1915_s22 = sphi %s2010_s22, %s2347_s22   ;;  %s1911_s21 = sphi %s2008_s21, %s2346_s21  }
   0x4   : > { %p41_p1 = scmp.ge.s32.totalorder %s39_s24, 2  ;;  %p548_p2 = scmp.lt.s32.totalorder %s1919_s23, 3 }
   0x6   : > { %s2349_s24 = smov (%p41_p1, %s39_s24), 0  ;;  %p549_p3 = pnand %p1664_p0, %p548_p2 }
   0x7   : > { %p643_p4 = scmp.lt.s32.totalorder (!%p549_p3), %s1911_s21, 1  ;;  %v1921_v0 = vmov (!%p549_p3), 0.0   ;;  %s2344_s5 = sld [smem:[#allocation5_spill]] (!%p549_p3)  ;;  %v1922_v2 = vmov (!%p549_p3), 0   ;;  %v801_v3 = vld [vmem:[%s2332_s7] sm:$0xff] (!%p549_p3)  ;;  %v1201_v7 = vld [vmem:[%s2335_s10 + $0x10] sm:$0xff] (!%p549_p3) }
   0x8   : > { %552 = sbr.rel (%p549_p3) target bundleno = 500 (0x1f4), region = 80  ;;  %793 = vmatprep.mubr.f32.mxu0 (!%p549_p3), %v1921_v0  ;;  %874 = vmatprep.mubr.f32.mxu1 (!%p549_p3), %v1921_v0  ;;  %s2345_s17 = sld [smem:[#allocation4_spill]] (!%p549_p3)  ;;  %v897_v28 = vld [vmem:[%s2333_s8 + $0x80] sm:$0xff] (!%p549_p3)  ;;  %v898_v29 = vld [vmem:[%s2333_s8 + $0x88] sm:$0xff] (!%p549_p3)  ;;  %v899_v35 = vld [vmem:[%s2333_s8 + $0x90] sm:$0xff] (!%p549_p3)  ;;  %vm725_vm0 = vcmask (!%p549_p3), 261120  }
   0x9   : > { %1887 = vset.pattern.permute.xlu0 (!%p549_p3), %v1922_v2  ;;  %1888 = vset.pattern.permute.xlu1 (!%p549_p3), %v1922_v2  ;;  %v1384_v31 = vld [vmem:[%s2338_s13] sm:$0xff] (!%p549_p3)  ;;  %v1781_v32 = vpack.c.bf16 (!%p549_p3), %v898_v29, %v897_v28  ;;  %v882_v34 = vld [vmem:[%s2333_s8 + $0x8] sm:$0xff] (!%p549_p3)  ;;  %v900_v36 = vld [vmem:[%s2333_s8 + $0x98] sm:$0xff] (!%p549_p3)  ;;  %vm917_vm1 = vcmask (!%p549_p3), 31744  }
   0xa   : > { %v881_v33 = vld [vmem:[%s2333_s8] sm:$0xff] (!%p549_p3)  ;;  %v883_v40 = vld [vmem:[%s2333_s8 + $0x10] sm:$0xff] (!%p549_p3)  ;;  %v884_v41 = vld [vmem:[%s2333_s8 + $0x18] sm:$0xff] (!%p549_p3)  ;;  %v1785_v43 = vpack.c.bf16 (!%p549_p3), %v900_v36, %v899_v35  ;;  %918 = vst.msk [vmem:[#allocation2] sm:$0xff] (!%p549_p3), %vm917_vm1, %v1921_v0 }
   0xb   : > { %v718_v37 = vld [vmem:[%s2329_s4] sm:$0xff] (!%p549_p3)  ;;  %v1783_v38 = vpack.c.bf16 (!%p549_p3), %v882_v34, %v881_v33  ;;  %v1386_v42 = vld [vmem:[%s2338_s13 + $0x10] sm:$0xff] (!%p549_p3)  ;;  %v902_v45 = vld [vmem:[%s2333_s8 + $0xa8] sm:$0xff] (!%p549_p3)  ;;  %v1787_v46 = vpack.c.bf16 (!%p549_p3), %v884_v41, %v883_v40  ;;  %919 = vst.msk [vmem:[#allocation3] sm:$0xff] (!%p549_p3), %vm917_vm1, %v1921_v0 }
   0xc   : > { %v800_v39 = vld [vmem:[%s2331_s6] sm:$0xff] (!%p549_p3)  ;;  %v886_v48 = vld [vmem:[%s2333_s8 + $0x28] sm:$0xff] (!%p549_p3)  ;;  %v903_v51 = vld [vmem:[%s2333_s8 + $0xb0] sm:$0xff] (!%p549_p3) }
   0xd   : > { %v719_v1 = vld [vmem:[%s2344_s5] sm:$0xff] (!%p549_p3)  ;;  %v904_v52 = vld [vmem:[%s2333_s8 + $0xb8] sm:$0xff] (!%p549_p3)  ;;  %v887_v54 = vld [vmem:[%s2333_s8 + $0x30] sm:$0xff] (!%p549_p3) }
   0xe   : > { %722 = vperm.xlu0 (!%p549_p3), %1887, %v719_v1   ;;  %v901_v44 = vld [vmem:[%s2333_s8 + $0xa0] sm:$0xff] (!%p549_p3)  ;;  %v888_v55 = vld [vmem:[%s2333_s8 + $0x38] sm:$0xff] (!%p549_p3)  ;;  %v1233_v56 = vld [vmem:[%s2336_s11 + $0x10] sm:$0xff] (!%p549_p3)  ;;  %v1793_v57 = vpack.c.bf16 (!%p549_p3), %v904_v52, %v903_v51 }
   0xf   : > { %s2351_s21 = smov (!%p643_p4, %s1911_s21), 1  ;;  %v885_v47 = vld [vmem:[%s2333_s8 + $0x20] sm:$0xff]  ;;  %v1789_v50 = vpack.c.bf16 %v902_v45, %v901_v44  ;;  %v906_v59 = vld [vmem:[%s2333_s8 + $0xc8] sm:$0xff]  ;;  %v1795_v60 = vpack.c.bf16 %v888_v55, %v887_v54  ;;  %v907_v2 = vld [vmem:[%s2333_s8 + $0xd0] sm:$0xff] }
  0x10   : > { %s2034_s27 = sshll.u32 %s2351_s21, 6  ;;  %v1231_v49 = vld [vmem:[%s2336_s11] sm:$0xff]  ;;  %v1791_v53 = vpack.c.bf16 %v886_v48, %v885_v47  ;;  %v890_v62 = vld [vmem:[%s2333_s8 + $0x48] sm:$0xff]  ;;  %v1234_v34 = vld [vmem:[%s2336_s11 + $0x18] sm:$0xff] }
  0x11   : > { %s650_s18 = scalar_lea.vmem %s2345_s17, %s2034_s27  ;;  %s660_s25 = scalar_lea.vmem %s2326_s1, %s2034_s27  ;;  %v905_v58 = vld [vmem:[%s2333_s8 + $0xc0] sm:$0xff]  ;;  %v1200_v29 = vld [vmem:[%s2335_s10 + $0x8] sm:$0xff]  ;;  %v1419_v36 = vld [vmem:[%s2339_s14 + $0x18] sm:$0xff] }
  0x12   : > { %v703_v4 = vld [vmem:[%s650_s18 + $0x8] sm:$0xff]  ;;  %v705_v5 = vld [vmem:[%s650_s18 + $0x18] sm:$0xff]  ;;  %v702_v6 = vld [vmem:[%s650_s18] sm:$0xff]  ;;  %804 = vperm.xlu0 %1887, %v801_v3   ;;  %v1797_v1 = vpack.c.bf16 %v906_v59, %v905_v58  ;;  %s2176_s17 = scalar_lea.vmem %s2327_s2, %s2034_s27  ;;  %s2182_s20 = scalar_lea.vmem %s2328_s3, %s2034_s27 }
  0x13   : > { %v1765_v8 = vpack.c.bf16 %v705_v5, %v703_v4  ;;  %v711_v9 = vld [vmem:[%s660_s25 + $0x8] sm:$0xff]  ;;  %v713_v10 = vld [vmem:[%s660_s25 + $0x18] sm:$0xff]  ;;  %v704_v11 = vld [vmem:[%s650_s18 + $0x10] sm:$0xff]  ;;  %s2289_s30 = scalar_lea.vmem %s2340_s15, %s2034_s27  ;;  %s1675_s27 = sshll.u32 %s2351_s21, 3 }
  0x14   : > { %v1773_v12 = vpack.c.bf16 %v713_v10, %v711_v9  ;;  %v1767_v13 = vpack.c.bf16 %v704_v11, %v702_v6  ;;  %v710_v14 = vld [vmem:[%s660_s25] sm:$0xff]  ;;  %v712_v15 = vld [vmem:[%s660_s25 + $0x10] sm:$0xff]  ;;  %v707_v16 = vld [vmem:[%s650_s18 + $0x28] sm:$0xff]  ;;  %s701_s19 = scalar_lea.vmem %s2341_s16, %s1675_s27 }
  0x15   : > { %1766 = vmatprep.subr.bf16.mxu0 %v1765_v8  ;;  %v1775_v17 = vpack.c.bf16 %v712_v15, %v710_v14  ;;  %v709_v18 = vld [vmem:[%s650_s18 + $0x38] sm:$0xff]  ;;  %v715_v19 = vld [vmem:[%s660_s25 + $0x28] sm:$0xff]  ;;  %v706_v23 = vld [vmem:[%s650_s18 + $0x20] sm:$0xff] }
  0x16   : > { %v717_v20 = vld [vmem:[%s660_s25 + $0x38] sm:$0xff]  ;;  %1774 = vmatprep.subr.bf16.mxu1 %v1773_v12  ;;  %1768 = vmatpush1.bf16.msra.mxu0 %v1767_v13  ;;  %v1769_v21 = vpack.c.bf16 %v709_v18, %v707_v16  ;;  %v708_v24 = vld [vmem:[%s650_s18 + $0x30] sm:$0xff]  ;;  %v714_v25 = vld [vmem:[%s660_s25 + $0x20] sm:$0xff] }
  0x17   : > { %v1777_v22 = vpack.c.bf16 %v717_v20, %v715_v19  ;;  %1776 = vmatpush1.bf16.msra.mxu1 %v1775_v17  ;;  %v1771_v26 = vpack.c.bf16 %v708_v24, %v706_v23  ;;  %v716_v27 = vld [vmem:[%s660_s25 + $0x30] sm:$0xff]  ;;  %1215 = vperm.xlu0 %1887, %v1201_v7   ;;  %v889_v61 = vld [vmem:[%s2333_s8 + $0x40] sm:$0xff]  ;;  %v908_v3 = vld [vmem:[%s2333_s8 + $0xd8] sm:$0xff] }
  0x18   : > { %1770 = vmatprep.subr.bf16.mxu0 %v1769_v21  ;;  %v1779_v30 = vpack.c.bf16 %v716_v27, %v714_v25  ;;  %v1416_v63 = vld [vmem:[%s2339_s14] sm:$0xff]  ;;  %v1799_v4 = vpack.c.bf16 %v890_v62, %v889_v61  ;;  %v891_v5 = vld [vmem:[%s2333_s8 + $0x50] sm:$0xff]  ;;  %v892_v6 = vld [vmem:[%s2333_s8 + $0x58] sm:$0xff]  ;;  %v1801_v8 = vpack.c.bf16 %v908_v3, %v907_v2 }
  0x19   : > { %1778 = vmatprep.subr.bf16.mxu1 %v1777_v22  ;;  %v1418_v7 = vld [vmem:[%s2339_s14 + $0x10] sm:$0xff]  ;;  %v909_v9 = vld [vmem:[%s2333_s8 + $0xe0] sm:$0xff]  ;;  %v910_v10 = vld [vmem:[%s2333_s8 + $0xe8] sm:$0xff]  ;;  %v1803_v11 = vpack.c.bf16 %v892_v6, %v891_v5 }
  0x1a   : > { %1772 = vmatpush1.bf16.msra.mxu0 %v1771_v26  ;;  %v1805_v12 = vpack.c.bf16 %v910_v10, %v909_v9  ;;  %v893_v13 = vld [vmem:[%s2333_s8 + $0x60] sm:$0xff]  ;;  %v894_v14 = vld [vmem:[%s2333_s8 + $0x68] sm:$0xff]  ;;  %v911_v16 = vld [vmem:[%s2333_s8 + $0xf0] sm:$0xff] }
  0x1b   : > { %1780 = vmatpush1.bf16.msra.mxu1 %v1779_v30  ;;  %1390 = vperm.xlu0 %1887, %v1384_v31   ;;  %v1807_v15 = vpack.c.bf16 %v894_v14, %v893_v13  ;;  %v912_v17 = vld [vmem:[%s2333_s8 + $0xf8] sm:$0xff]  ;;  %v895_v19 = vld [vmem:[%s2333_s8 + $0x70] sm:$0xff]  ;;  %v1091_v22 = vld [vmem:[%s2176_s17 + $0x8] sm:$0xff] }
  0x1c   : > { %1782 = vmatprep.subr.bf16.mxu0 %v1781_v32  ;;  %1814 = vmatprep.subr.bf16.mxu1 %v1781_v32  ;;  %v1809_v18 = vpack.c.bf16 %v912_v17, %v911_v16  ;;  %v896_v20 = vld [vmem:[%s2333_s8 + $0x78] sm:$0xff]  ;;  %v1276_v24 = vld [vmem:[%s2182_s20 + $0x8] sm:$0xff]  ;;  %v1199_v28 = vld [vmem:[%s2335_s10] sm:$0xff] }
  0x1d   : > { %1676 = vmatmul.mubr.msk.f32.vlgmr.msra.gmra.mrb[0].mxu0 %vm725_vm0, %v718_v37  ;;  %v1811_v21 = vpack.c.bf16 %v896_v20, %v895_v19  ;;  %v1093_v23 = vld [vmem:[%s2176_s17 + $0x18] sm:$0xff]  ;;  %1205 = vperm.xlu1 %1888, %v1199_v28   ;;  %v1385_v31 = vld [vmem:[%s2338_s13 + $0x8] sm:$0xff]  ;;  %v1275_v40 = vld [vmem:[%s2182_s20] sm:$0xff] }
  0x1e   : > { %1677 = vmatmul.mubr.msk.f32.vlgmr.msra.gmra.mrb[0].mxu1 %vm725_vm0, %v800_v39  ;;  %1784 = vmatpush3.bf16.msra.mxu0 %v1783_v38  ;;  %v1845_v25 = vpack.c.bf16 %v1093_v23, %v1091_v22  ;;  %v1278_v26 = vld [vmem:[%s2182_s20 + $0x18] sm:$0xff]  ;;  %v1232_v33 = vld [vmem:[%s2336_s11 + $0x8] sm:$0xff]  ;;  %v1092_v39 = vld [vmem:[%s2176_s17 + $0x10] sm:$0xff] }
  0x1f   : > { %1400 = vperm.xlu0 %1887, %v1386_v42   ;;  %1816 = vmatpush3.bf16.msra.mxu1 %v1783_v38  ;;  %v1853_v27 = vpack.c.bf16 %v1278_v26, %v1276_v24  ;;  %v1202_v30 = vld [vmem:[%s2335_s10 + $0x18] sm:$0xff]  ;;  %v1417_v35 = vld [vmem:[%s2339_s14 + $0x8] sm:$0xff]  ;;  %v1090_v38 = vld [vmem:[%s2176_s17] sm:$0xff] }
  0x20   : > { %1786 = vmatprep.subr.bf16.mxu0 %v1785_v43  ;;  %1818 = vmatprep.subr.bf16.mxu1 %v1785_v43  ;;  %v1387_v32 = vld [vmem:[%s2338_s13 + $0x18] sm:$0xff]  ;;  %v1277_v42 = vld [vmem:[%s2182_s20 + $0x10] sm:$0xff]  ;;  %v1095_v43 = vld [vmem:[%s2176_s17 + $0x28] sm:$0xff]  ;;  %v1847_v52 = vpack.c.bf16 %v1092_v39, %v1090_v38 }
  0x21   : > { %1210 = vperm.xlu1 %1888, %v1200_v29   ;;  %v1097_v44 = vld [vmem:[%s2176_s17 + $0x38] sm:$0xff]  ;;  %v1280_v47 = vld [vmem:[%s2182_s20 + $0x28] sm:$0xff]  ;;  %v1855_v55 = vpack.c.bf16 %v1277_v42, %v1275_v40  ;;  %v1096_v58 = vld [vmem:[%s2176_s17 + $0x30] sm:$0xff] }
  0x22   : > { %1788 = vmatpush3.bf16.msra.mxu0 %v1787_v46  ;;  %v1282_v48 = vld [vmem:[%s2182_s20 + $0x38] sm:$0xff]  ;;  %v1279_v61 = vld [vmem:[%s2182_s20 + $0x20] sm:$0xff]  ;;  %v1281_v62 = vld [vmem:[%s2182_s20 + $0x30] sm:$0xff] }
  0x23   : > { %1237 = vperm.xlu0 %1887, %v1231_v49   ;;  %1820 = vmatpush3.bf16.msra.mxu1 %v1787_v46  ;;  %v1086_v2 = vld [vmem:[%s2334_s9] sm:$0xff]  ;;  %v1272_v5 = vld [vmem:[%s2337_s12 + $0x8] sm:$0xff]  ;;  %v1088_v6 = vld [vmem:[%s2334_s9 + $0x10] sm:$0xff] }
  0x24   : > { %1790 = vmatprep.subr.bf16.mxu0 %v1789_v50  ;;  %1822 = vmatprep.subr.bf16.mxu1 %v1789_v50  ;;  %v1271_v3 = vld [vmem:[%s2337_s12] sm:$0xff]  ;;  %v1274_v9 = vld [vmem:[%s2337_s12 + $0x18] sm:$0xff] }
  0x25   : > { %1220 = vperm.xlu1 %1888, %v1202_v30  }
  0x26   : > { %1792 = vmatpush3.bf16.msra.mxu0 %v1791_v53 }
  0x27   : > { %1247 = vperm.xlu0 %1887, %v1233_v56   ;;  %1824 = vmatpush3.bf16.msra.mxu1 %v1791_v53  ;;  %v1849_v56 = vpack.c.bf16 %v1097_v44, %v1095_v43 }
  0x28   : > { %1794 = vmatprep.subr.bf16.mxu0 %v1793_v57  ;;  %1826 = vmatprep.subr.bf16.mxu1 %v1793_v57  ;;  %v1094_v57 = vld [vmem:[%s2176_s17 + $0x20] sm:$0xff] }
  0x29   : > { %1395 = vperm.xlu1 %1888, %v1385_v31  }
  0x2a   : > { %1796 = vmatpush3.bf16.msra.mxu0 %v1795_v60 }
  0x2b   : > { %1422 = vperm.xlu0 %1887, %v1416_v63   ;;  %1828 = vmatpush3.bf16.msra.mxu1 %v1795_v60  ;;  %v1857_v60 = vpack.c.bf16 %v1282_v48, %v1280_v47  ;;  %v1851_v63 = vpack.c.bf16 %v1096_v58, %v1094_v57 }
  0x2c   : > { %1798 = vmatprep.subr.bf16.mxu0 %v1797_v1  ;;  %1830 = vmatprep.subr.bf16.mxu1 %v1797_v1  ;;  %v1859_v1 = vpack.c.bf16 %v1281_v62, %v1279_v61 }
  0x2d   : > { %1405 = vperm.xlu1 %1888, %v1387_v32  }
  0x2e   : > { %1800 = vmatpush3.bf16.msra.mxu0 %v1799_v4 }
  0x2f   : > { %1432 = vperm.xlu0 %1887, %v1418_v7   ;;  %1832 = vmatpush3.bf16.msra.mxu1 %v1799_v4  ;;  %v1087_v4 = vld [vmem:[%s2334_s9 + $0x8] sm:$0xff]  ;;  %v1273_v7 = vld [vmem:[%s2337_s12 + $0x10] sm:$0xff] }
  0x30   : > { %1802 = vmatprep.subr.bf16.mxu0 %v1801_v8  ;;  %1834 = vmatprep.subr.bf16.mxu1 %v1801_v8  ;;  %v1089_v8 = vld [vmem:[%s2334_s9 + $0x18] sm:$0xff] }
  0x31   : > { %1242 = vperm.xlu1 %1888, %v1232_v33  }
  0x32   : > { %1804 = vmatpush3.bf16.msra.mxu0 %v1803_v11 }
  0x33   : > { %1836 = vmatpush3.bf16.msra.mxu1 %v1803_v11  ;;  %1806 = vmatprep.subr.bf16.mxu0 %v1805_v12 }
  0x34   : > { %1838 = vmatprep.subr.bf16.mxu1 %v1805_v12 }
  0x35   : > { %1252 = vperm.xlu1 %1888, %v1234_v34  }
  0x36   : > { %1808 = vmatpush3.bf16.msra.mxu0 %v1807_v15 }
  0x37   : > { %1840 = vmatpush3.bf16.msra.mxu1 %v1807_v15  ;;  %1810 = vmatprep.subr.bf16.mxu0 %v1809_v18 }
  0x38   : > { %1842 = vmatprep.subr.bf16.mxu1 %v1809_v18 }
  0x39   : > { %1427 = vperm.xlu1 %1888, %v1417_v35  }
  0x3a   : > { %1812 = vmatpush3.bf16.msra.mxu0 %v1811_v21 }
  0x3b   : > { %1844 = vmatpush3.bf16.msra.mxu1 %v1811_v21  ;;  %1846 = vmatprep.subr.bf16.mxu0 %v1845_v25  ;;  %v920_v21 = vld [vmem:[#allocation2] sm:$0xff] }
  0x3c   : > { %1854 = vmatprep.subr.bf16.mxu1 %v1853_v27 }
  0x3d   : > { %1437 = vperm.xlu1 %1888, %v1419_v36  }
  0x8d   : > { %v723_v37 = vpop.permute.xlu0 %722 }
  0x91   : > { %v805_v49 = vpop.permute.xlu0 %804 }
  0x96   : > { %v2271_v12 = vpop.permute.xlu0 %1215 }
  0x9a   : > { %v1391_v14 = vpop.permute.xlu0 %1390 }
  0x9c   : > { %v1206_v10 = vpop.permute.xlu1 %1205 }
  0x9e   : > { %v2275_v16 = vpop.permute.xlu0 %1400 }
  0xa0   : > { %v1211_v11 = vpop.permute.xlu1 %1210 }
  0xa2   : > { %v1238_v18 = vpop.permute.xlu0 %1237 }
  0xa4   : > { %v2273_v13 = vpop.permute.xlu1 %1220 }
  0xa6   : > { %v2279_v28 = vpop.permute.xlu0 %1247 }
  0xa8   : > { %v1396_v15 = vpop.permute.xlu1 %1395 }
  0xaa   : > { %v1423_v38 = vpop.permute.xlu0 %1422 }
  0xac   : > { %v2277_v17 = vpop.permute.xlu1 %1405 }
  0xb0   : > { %v1243_v23 = vpop.permute.xlu1 %1242 }
  0xb4   : > { %v2283_v30 = vpop.permute.xlu1 %1252 }
  0xf0   : > { %v795_v41 = vpop.f32.mrb[0].mxu0 }
  0xf1   : > { %v876_v45 = vpop.f32.mrb[0].mxu1  ;;  %v797_v46 = vpop.f32.mrb[1].mxu0  ;;  %v796_v53 = vadd.f32 %v795_v41, %v723_v37 }
  0xf2   : > { %v798_v50 = vadd.f32 %v797_v46, %v723_v37  ;;  %v878_v51 = vpop.f32.mrb[1].mxu1  ;;  %v877_v59 = vadd.f32 %v876_v45, %v805_v49 }
  0xf3   : > { %v879_v54 = vadd.f32 %v878_v51, %v805_v49 }
  0xf4   : > { %985 = vmatprep.mubr.f32.mxu0 %v798_v50 }
  0xf5   : > { %1059 = vmatprep.mubr.f32.mxu1 %v879_v54  ;;  %986 = vmatmul.mubr.f32.vlgmr.msra.gmra.mrb[2].mxu0 %v796_v53 }
  0xf6   : > { %1060 = vmatmul.mubr.f32.vlgmr.msra.gmra.mrb[2].mxu1 %v877_v59  ;;  %1848 = vmatpush1.bf16.msra.mxu0 %v1847_v52 }
  0xf7   : > { %1856 = vmatpush1.bf16.msra.mxu1 %v1855_v55  ;;  %1850 = vmatprep.subr.bf16.mxu0 %v1849_v56  ;;  %v1428_v56 = vpop.permute.xlu1 %1427 }
  0xf8   : > { %1858 = vmatprep.subr.bf16.mxu1 %v1857_v60  ;;  %1174 = vmatprep.mubr.f32.mxu0 %v1921_v0 }
  0xf9   : > { %1359 = vmatprep.mubr.f32.mxu1 %v1921_v0 }
  0xfa   : > { %1852 = vmatpush1.bf16.msra.mxu0 %v1851_v63 }
  0xfb   : > { %1860 = vmatpush1.bf16.msra.mxu1 %v1859_v1 }
  0xfd   : > { %1680 = vmatmul.mubr.msk.f32.vlgmr.msra.gmra.mrb[4].mxu0 %vm725_vm0, %v1086_v2 }
  0xfe   : > { %1684 = vmatmul.mubr.msk.f32.vlgmr.msra.gmra.mrb[4].mxu1 %vm725_vm0, %v1271_v3  ;;  %1180 = vmatprep.mubr.f32.mxu0 %v1921_v0 }
  0xff   : > { %1365 = vmatprep.mubr.f32.mxu1 %v1921_v0 }
 0x101   : > { %1681 = vmatmul.mubr.msk.f32.gmra.mrb[6].mxu0 %vm725_vm0, %v1087_v4 }
 0x102   : > { %1685 = vmatmul.mubr.msk.f32.gmra.mrb[6].mxu1 %vm725_vm0, %v1272_v5  ;;  %1186 = vmatprep.mubr.f32.mxu0 %v1921_v0 }
 0x103   : > { %1371 = vmatprep.mubr.f32.mxu1 %v1921_v0 }
 0x105   : > { %1682 = vmatmul.mubr.msk.f32.gmra.mrb[8].mxu0 %vm725_vm0, %v1088_v6 }
 0x106   : > { %1686 = vmatmul.mubr.msk.f32.gmra.mrb[8].mxu1 %vm725_vm0, %v1273_v7  ;;  %1192 = vmatprep.mubr.f32.mxu0 %v1921_v0 }
 0x107   : > { %1377 = vmatprep.mubr.f32.mxu1 %v1921_v0  ;;  %v994_v0 = vld [vmem:[#allocation3] sm:$0xff] }
 0x109   : > { %1683 = vmatmul.mubr.msk.f32.gmra.mrb[10].mxu0 %vm725_vm0, %v1089_v8 }
 0x10a   : > { %1687 = vmatmul.mubr.msk.f32.gmra.mrb[10].mxu1 %vm725_vm0, %v1274_v9 }
 0x1c8   : > { %v1727_v19 = vpop.f32.mrb[2].mxu0 }
 0x1c9   : > { %v1762_v20 = vpop.f32.mrb[2].mxu1  ;;  %v1728_v22 = vpop.f32.mrb[3].mxu0 }
 0x1ca   : > { %v1729_v24 = vadd.f32 %v1728_v22, %v1727_v19  ;;  %v1763_v25 = vpop.f32.mrb[3].mxu1 }
 0x1cb   : > { %v1764_v26 = vadd.f32 %v1763_v25, %v1762_v20 }
 0x1cc   : > { %v991_v27 = vadd.f32 %v1729_v24, %v920_v21 }
 0x1cd   : > { %v1065_v29 = vadd.f32 %v1764_v26, %v994_v0 }
 0x1ce   : > { %993 = vst.msk [vmem:[#allocation2] sm:$0xff] %vm917_vm1, %v991_v27 }
 0x1cf   : > { %1066 = vst.msk [vmem:[#allocation3] sm:$0xff] %vm917_vm1, %v1065_v29 }
 0x1d0   : > { %v1176_v31 = vpop.f32.mrb[4].mxu0 }
 0x1d1   : > { %v1223_v32 = vmul.f32 %v1206_v10, %v1176_v31  ;;  %v1361_v33 = vpop.f32.mrb[4].mxu1  ;;  %v1178_v34 = vpop.f32.mrb[5].mxu0 }
 0x1d2   : > { %v1408_v35 = vmul.f32 %v1391_v14, %v1361_v33  ;;  %v1224_v36 = vmul.f32 %v1206_v10, %v1178_v34  ;;  %v1363_v37 = vpop.f32.mrb[5].mxu1  ;;  %v1438_v34 = vpop.permute.xlu1 %1437 }
 0x1d3   : > { %v1255_v39 = vadd.f32 %v1238_v18, %v1223_v32  ;;  %v1409_v40 = vmul.f32 %v1391_v14, %v1363_v37  ;;  %v1433_v14 = vpop.permute.xlu0 %1432 }
 0x1d4   : > { %v1440_v41 = vadd.f32 %v1423_v38, %v1408_v35  ;;  %v1256_v42 = vadd.f32 %v1238_v18, %v1224_v36  ;;  %v1182_v43 = vpop.f32.mrb[6].mxu0 }
 0x1d5   : > { %v1070_v44 = vld [vmem:[#allocation2] sm:$0xff]  ;;  %v1263_v45 = vmax.f32 %v1255_v39, 0.0  ;;  %v1441_v46 = vadd.f32 %v1423_v38, %v1409_v40  ;;  %v1225_v47 = vmul.f32 %v1211_v11, %v1182_v43  ;;  %v1367_v48 = vpop.f32.mrb[6].mxu1  ;;  %v1184_v49 = vpop.f32.mrb[7].mxu0 }
 0x1d6   : > { %v1678_v50 = vmul.f32 -1.442695, %v1070_v44  ;;  %v1077_v51 = vld [vmem:[#allocation3] sm:$0xff]  ;;  %v1448_v52 = vmax.f32 %v1440_v41, 0.0  ;;  %v1264_v53 = vmax.f32 %v1256_v42, 0.0  ;;  %v1410_v54 = vmul.f32 %v1396_v15, %v1367_v48  ;;  %v1369_v55 = vpop.f32.mrb[7].mxu1 }
 0x1d7   : > { %v1679_v57 = vmul.f32 -1.442695, %v1077_v51  ;;  %v1449_v58 = vmax.f32 %v1441_v46, 0.0  ;;  %v1257_v59 = vadd.f32 %v1243_v23, %v1225_v47  ;;  %v1226_v60 = vmul.f32 %v1211_v11, %v1184_v49 }
 0x1d8   : > { %1889 = vpow2.f32 %v1678_v50  ;;  %v1456_v61 = vadd.f32 %v1448_v52, %v1263_v45  ;;  %v1442_v62 = vadd.f32 %v1428_v56, %v1410_v54  ;;  %v1411_v63 = vmul.f32 %v1396_v15, %v1369_v55  ;;  %v1188_v1 = vpop.f32.mrb[8].mxu0 }
 0x1d9   : > { %1891 = vpow2.f32 %v1679_v57  ;;  %v1457_v2 = vadd.f32 %v1449_v58, %v1264_v53  ;;  %v1265_v3 = vmax.f32 %v1257_v59, 0.0  ;;  %v1258_v4 = vadd.f32 %v1243_v23, %v1226_v60  ;;  %v1373_v5 = vpop.f32.mrb[8].mxu1  ;;  %v1190_v6 = vpop.f32.mrb[9].mxu0 }
 0x1da   : > { %1464 = vst [vmem:[%s2289_s30] sm:$0xff] %v1456_v61  ;;  %v1450_v7 = vmax.f32 %v1442_v62, 0.0  ;;  %v1443_v8 = vadd.f32 %v1428_v56, %v1411_v63  ;;  %v1227_v9 = vmul.f32 %v2271_v12, %v1188_v1  ;;  %v1412_v10 = vmul.f32 %v2275_v16, %v1373_v5  ;;  %v1375_v11 = vpop.f32.mrb[9].mxu1 }
 0x1db   : > { %1465 = vst [vmem:[%s2289_s30 + $0x8] sm:$0xff] %v1457_v2  ;;  %v1266_v18 = vmax.f32 %v1258_v4, 0.0  ;;  %v1228_v15 = vmul.f32 %v2271_v12, %v1190_v6  ;;  %v1413_v19 = vmul.f32 %v2275_v16, %v1375_v11 }
 0x1dc   : > { %v1458_v20 = vadd.f32 %v1450_v7, %v1265_v3  ;;  %v1451_v21 = vmax.f32 %v1443_v8, 0.0  ;;  %v1259_v22 = vadd.f32 %v2279_v28, %v1227_v9  ;;  %v1444_v23 = vadd.f32 %v1433_v14, %v1412_v10  ;;  %v1194_v24 = vpop.f32.mrb[10].mxu0 }
 0x1dd   : > { %v1260_v0 = vadd.f32 %v2279_v28, %v1228_v15  ;;  %v1445_v25 = vadd.f32 %v1433_v14, %v1413_v19  ;;  %v1229_v26 = vmul.f32 %v2273_v13, %v1194_v24  ;;  %v1379_v27 = vpop.f32.mrb[10].mxu1  ;;  %v1196_v29 = vpop.f32.mrb[11].mxu0 }
 0x1de   : > { %1466 = vst [vmem:[%s2289_s30 + $0x10] sm:$0xff] %v1458_v20  ;;  %v1459_v31 = vadd.f32 %v1451_v21, %v1266_v18  ;;  %v1267_v32 = vmax.f32 %v1259_v22, 0.0  ;;  %v1452_v12 = vmax.f32 %v1444_v23, 0.0  ;;  %v1414_v16 = vmul.f32 %v2277_v17, %v1379_v27  ;;  %v1381_v33 = vpop.f32.mrb[11].mxu1 }
 0x1df   : > { %v1268_v35 = vmax.f32 %v1260_v0, 0.0  ;;  %v1453_v36 = vmax.f32 %v1445_v25, 0.0  ;;  %v1261_v28 = vadd.f32 %v2283_v30, %v1229_v26  ;;  %v1230_v37 = vmul.f32 %v2273_v13, %v1196_v29 }
 0x1e0   : > { %1467 = vst [vmem:[%s2289_s30 + $0x18] sm:$0xff] %v1459_v31  ;;  %v1460_v38 = vadd.f32 %v1452_v12, %v1267_v32  ;;  %v1446_v39 = vadd.f32 %v1438_v34, %v1414_v16  ;;  %v1415_v40 = vmul.f32 %v2277_v17, %v1381_v33 }
 0x1e1   : > { %v1461_v41 = vadd.f32 %v1453_v36, %v1268_v35  ;;  %v1269_v42 = vmax.f32 %v1261_v28, 0.0  ;;  %v1262_v43 = vadd.f32 %v2283_v30, %v1230_v37 }
 0x1e2   : > { %v1890_v44 = vpop.eup %1889  ;;  %1468 = vst [vmem:[%s2289_s30 + $0x20] sm:$0xff] %v1460_v38  ;;  %v1454_v45 = vmax.f32 %v1446_v39, 0.0  ;;  %v1447_v46 = vadd.f32 %v1438_v34, %v1415_v40 }
 0x1e3   : > { %v1892_v47 = vpop.eup %1891  ;;  %v1074_v48 = vadd.f32 1.0, %v1890_v44  ;;  %1469 = vst [vmem:[%s2289_s30 + $0x28] sm:$0xff] %v1461_v41  ;;  %v1270_v13 = vmax.f32 %v1262_v43, 0.0 }
 0x1e4   : > { %v1081_v49 = vadd.f32 1.0, %v1892_v47  ;;  %v1462_v50 = vadd.f32 %v1454_v45, %v1269_v42  ;;  %v1455_v51 = vmax.f32 %v1447_v46, 0.0 }
 0x1e5   : > { %1893 = vrcp.f32 %v1074_v48 }
 0x1e6   : > { %1895 = vrcp.f32 %v1081_v49  ;;  %1470 = vst [vmem:[%s2289_s30 + $0x30] sm:$0xff] %v1462_v50  ;;  %v1463_v17 = vadd.f32 %v1455_v51, %v1270_v13 }
 0x1e8   : > { %1471 = vst [vmem:[%s2289_s30 + $0x38] sm:$0xff] %v1463_v17 }
 0x1ef   : > { %v1894_v30 = vpop.eup %1893 }
 0x1f0   : > { %v1896_v52 = vpop.eup %1895 }
 0x1f1   : > { %v1084_v53 = vadd.f32 %v1896_v52, %v1894_v30 }
 0x1f3   : > { %1085 = vst.msk [vmem:[%s701_s19] sm:$0xff] %vm917_vm1, %v1084_v53 }
 0x1f4 PF: > { %s27_s23 = sadd.s32 1, %s1919_s23   ;;  %s2346_s21 = smov %s1915_s22 }
 0x1f5   : > { %p24_p5 = scmp.ge.s32.totalorder %s27_s23, 4   ;;  %s2347_s22 = smov %s2349_s24 }
 0x1f7   :  { %26 = sbr.rel (!%p24_p5) target bundleno = 3 (0x3), region = 142 }

// kernel: caam_wby_forward.3
= control target key start
LH: loop header
LB: loop body
LE: loop exit
PB: predicated region body
PF: predicated region fallthrough
CT: control target
= control target key end

     0   :  { %s2905_s21 = smov 0   ;;  %s2907_s22 = smov 0   ;;  %s3994_s0 = inlined_call_operand.vmem [shape: f32[2,256,32], index: 0, kind: input, shape index: {}]   ;;  %s3995_s1 = inlined_call_operand.vmem [shape: f32[4,8,32], index: 1, kind: input, shape index: {}]   ;;  %s3996_s2 = inlined_call_operand.vmem [shape: f32[4,8,32], index: 2, kind: input, shape index: {}]   ;;  %s3997_s3 = inlined_call_operand.vmem [shape: f32[4,8,32], index: 3, kind: input, shape index: {}]   ;;  %s3998_s4 = inlined_call_operand.vmem [shape: f32[32,32], index: 4, kind: input, shape index: {}]   ;;  %s3999_s5 = inlined_call_operand.vmem [shape: f32[1,32], index: 5, kind: input, shape index: {}]   ;;  %s4000_s6 = inlined_call_operand.vmem [shape: f32[2,256,32], index: 6, kind: output, shape index: {}]  }
   0x1   :  { %s2909_s23 = smov 0   ;;  %s2911_s24 = smov 0  }
   0x2   :  { %s2913_s25 = smov 0  }
   0x3 LB: > { %s25_s26 = sadd.s32 1, %s2859_s23  ;;  %s28_s27 = sadd.s32 1, %s2863_s24  ;;  %s2867_s25 = sphi %s2913_s25, %s16_s25   ;;  %s2863_s24 = sphi %s2911_s24, %s4156_s24   ;;  %s2859_s23 = sphi %s2909_s23, %s4155_s23   ;;  %s2855_s22 = sphi %s2907_s22, %s4154_s22   ;;  %s2851_s21 = sphi %s2905_s21, %s4153_s21  }
   0x4   : > { %p26_p0 = scmp.ge.s32.totalorder %s25_s26, 4  ;;  %p2060_p1 = scmp.ge.s32.totalorder %s2867_s25, 1 }
   0x5   : > { %p251_p2 = scmp.lt.s32.totalorder %s2867_s25, 9 }
   0x6   : > { %s4158_s26 = smov (%p26_p0, %s25_s26), 0  ;;  %s4160_s27 = smov (!%p26_p0, %s28_s27), %s2863_s24 }
   0x7   : > { %p252_p3 = pnand %p2060_p1, %p251_p2  ;;  %p30_p4 = scmp.ge.s32.totalorder %s4160_s27, 2 }
   0x9   : > { %s4162_s27 = smov (%p30_p4, %s4160_s27), 0  ;;  %255 = sbr.rel (%p252_p3) target bundleno = 1530 (0x5fa), region = 44 }
  0x10   : > { %p293_p5 = scmp.lt.s32.totalorder %s2855_s22, 1  ;;  %p298_p6 = scmp.lt.s32.totalorder %s2851_s21, 3  ;;  %vm348_vm0 = vcmask 261120   ;;  %v2869_v51 = vmov 0.0   ;;  %vm735_vm2 = vcmask 64512  }
  0x11   : > { %vm2950_vm1 = vmpackc.low %vm348_vm0, %vm348_vm0  ;;  %p2202_p7 = scmp.ne.s32.totalorder %s2851_s21, 3 }
  0x12   : > { %s4164_s22 = smov (!%p293_p5, %s2855_s22), 1 }
  0x13   : > { %s2238_s28 = sshll.u32 %s4164_s22, 8 }
  0x14   : > { %s2941_s7 = scalar_lea.vmem %s3994_s0, %s2238_s28  ;;  %s2946_s10 = scalar_lea.vmem %s4000_s6, %s2238_s28 }
  0x15   : > { %v331_v1 = vld [vmem:[%s2941_s7 + $0x80] sm:$0xff]  ;;  %v332_v2 = vld [vmem:[%s2941_s7 + $0x88] sm:$0xff]  ;;  %s299_s11 = scalar_select %p298_p6, %s2851_s21, 3  ;;  %v333_v6 = vld [vmem:[%s2941_s7 + $0x90] sm:$0xff] }
  0x16   : > { %v315_v3 = vld [vmem:[%s2941_s7] sm:$0xff]  ;;  %v2958_v4 = vpack.c.bf16 %v332_v2, %v331_v1  ;;  %v316_v5 = vld [vmem:[%s2941_s7 + $0x8] sm:$0xff]  ;;  %v334_v7 = vld [vmem:[%s2941_s7 + $0x98] sm:$0xff]  ;;  %s2199_s28 = sshll.u32 %s2851_s21, 3 }
  0x17   : > { %v2963_v8 = vpack.c.bf16 %v316_v5, %v315_v3  ;;  %v2965_v9 = vpack.c.bf16 %v334_v7, %v333_v6  ;;  %s2976_s12 = sshll.u32 %s299_s11, 3  ;;  %v317_v10 = vld [vmem:[%s2941_s7 + $0x10] sm:$0xff]  ;;  %v318_v11 = vld [vmem:[%s2941_s7 + $0x18] sm:$0xff]  ;;  %v335_v12 = vld [vmem:[%s2941_s7 + $0xa0] sm:$0xff]  ;;  %s1505_s29 = sshra.s32 %s2199_s28, 3 }
  0x18   : > { %2485 = vmatprep.subr.msk.bf16.mxu1 %vm2950_vm1, %v2958_v4  ;;  %2437 = vmatprep.subr.msk.bf16.mxu0 %vm2950_vm1, %v2958_v4  ;;  %v336_v13 = vld [vmem:[%s2941_s7 + $0xa8] sm:$0xff]  ;;  %s305_s15 = scalar_lea.vmem %s3996_s2, %s2976_s12  ;;  %v2995_v14 = vpack.c.bf16 %v318_v11, %v317_v10  ;;  %s301_s18 = scalar_lea.vmem %s3995_s1, %s2976_s12  ;;  %v319_v18 = vld [vmem:[%s2941_s7 + $0x20] sm:$0xff]  ;;  %v337_v20 = vld [vmem:[%s2941_s7 + $0xb0] sm:$0xff] }
  0x19   : > { %2488 = vmatpush3.bf16.xpose.msk.msra.mxu1 %vm2950_vm1, %v2963_v8  ;;  %2440 = vmatpush3.bf16.xpose.msk.msra.mxu0 %vm2950_vm1, %v2963_v8  ;;  %v3001_v15 = vpack.c.bf16 %v336_v13, %v335_v12  ;;  %v3003_v16 = vld [vmem:[%s305_s15] sm:$0xff]  ;;  %v320_v19 = vld [vmem:[%s2941_s7 + $0x28] sm:$0xff]  ;;  %v338_v21 = vld [vmem:[%s2941_s7 + $0xb8] sm:$0xff]  ;;  %s309_s22 = scalar_lea.vmem %s3997_s3, %s2976_s12  ;;  %s2240_s30 = sshll.u32 %s1505_s29, 4 }
  0x1a   : > { %2491 = vmatprep.subr.msk.bf16.mxu1 %vm2950_vm1, %v2965_v9  ;;  %2443 = vmatprep.subr.msk.bf16.mxu0 %vm2950_vm1, %v2965_v9  ;;  %v3007_v17 = vld [vmem:[%s301_s18] sm:$0xff]  ;;  %v2450_v22 = vpack.c.bf16 %v320_v19, %v319_v18  ;;  %v2453_v23 = vpack.c.bf16 %v338_v21, %v337_v20  ;;  %v321_v24 = vld [vmem:[%s2941_s7 + $0x30] sm:$0xff]  ;;  %v322_v25 = vld [vmem:[%s2941_s7 + $0x38] sm:$0xff] }
  0x1b   : > { %2307 = vmatprep.mubr.msk.f32.mxu1 %vm348_vm0, %v3003_v16  ;;  %2273 = vmatprep.mubr.msk.f32.mxu0 %vm348_vm0, %v3007_v17  ;;  %v339_v26 = vld [vmem:[%s2941_s7 + $0xc0] sm:$0xff]  ;;  %v340_v27 = vld [vmem:[%s2941_s7 + $0xc8] sm:$0xff]  ;;  %v2456_v28 = vpack.c.bf16 %v322_v25, %v321_v24  ;;  %v341_v32 = vld [vmem:[%s2941_s7 + $0xd0] sm:$0xff] }
  0x1c   : > { %v2459_v29 = vpack.c.bf16 %v340_v27, %v339_v26  ;;  %v323_v30 = vld [vmem:[%s2941_s7 + $0x40] sm:$0xff]  ;;  %v324_v31 = vld [vmem:[%s2941_s7 + $0x48] sm:$0xff]  ;;  %v342_v33 = vld [vmem:[%s2941_s7 + $0xd8] sm:$0xff] }
  0x1d   : > { %v2462_v34 = vpack.c.bf16 %v324_v31, %v323_v30  ;;  %v2465_v35 = vpack.c.bf16 %v342_v33, %v341_v32  ;;  %v325_v36 = vld [vmem:[%s2941_s7 + $0x50] sm:$0xff]  ;;  %v326_v37 = vld [vmem:[%s2941_s7 + $0x58] sm:$0xff]  ;;  %v343_v38 = vld [vmem:[%s2941_s7 + $0xe0] sm:$0xff] }
  0x1e   : > { %v344_v39 = vld [vmem:[%s2941_s7 + $0xe8] sm:$0xff]  ;;  %v2468_v40 = vpack.c.bf16 %v326_v37, %v325_v36  ;;  %v327_v42 = vld [vmem:[%s2941_s7 + $0x60] sm:$0xff]  ;;  %v345_v44 = vld [vmem:[%s2941_s7 + $0xf0] sm:$0xff] }
  0x1f   : > { %v2471_v41 = vpack.c.bf16 %v344_v39, %v343_v38  ;;  %v328_v43 = vld [vmem:[%s2941_s7 + $0x68] sm:$0xff]  ;;  %v346_v45 = vld [vmem:[%s2941_s7 + $0xf8] sm:$0xff]  ;;  %v329_v48 = vld [vmem:[%s2941_s7 + $0x70] sm:$0xff] }
  0x20   : > { %v2474_v46 = vpack.c.bf16 %v328_v43, %v327_v42  ;;  %v2477_v47 = vpack.c.bf16 %v346_v45, %v345_v44  ;;  %v330_v49 = vld [vmem:[%s2941_s7 + $0x78] sm:$0xff]  ;;  %s1509_s7 = scalar_lea.vmem [#allocation2], %s2240_s30 }
  0x21   : > { %2494 = vmatpush3.bf16.xpose.msk.msra.mxu1 %vm2950_vm1, %v2995_v14  ;;  %2446 = vmatpush3.bf16.xpose.msk.msra.mxu0 %vm2950_vm1, %v2995_v14  ;;  %v2480_v50 = vpack.c.bf16 %v330_v49, %v329_v48 }
  0x22   : > { %2497 = vmatprep.subr.msk.bf16.mxu1 %vm2950_vm1, %v3001_v15  ;;  %2449 = vmatprep.subr.msk.bf16.mxu0 %vm2950_vm1, %v3001_v15 }
  0x29   : > { %2500 = vmatpush3.bf16.xpose.msk.msra.mxu1 %vm2950_vm1, %v2450_v22  ;;  %2452 = vmatpush3.bf16.xpose.msk.msra.mxu0 %vm2950_vm1, %v2450_v22 }
  0x2a   : > { %2503 = vmatprep.subr.msk.bf16.mxu1 %vm2950_vm1, %v2453_v23  ;;  %2455 = vmatprep.subr.msk.bf16.mxu0 %vm2950_vm1, %v2453_v23 }
  0x31   : > { %2506 = vmatpush3.bf16.xpose.msk.msra.mxu1 %vm2950_vm1, %v2456_v28  ;;  %2458 = vmatpush3.bf16.xpose.msk.msra.mxu0 %vm2950_vm1, %v2456_v28 }
  0x32   : > { %2509 = vmatprep.subr.msk.bf16.mxu1 %vm2950_vm1, %v2459_v29  ;;  %2461 = vmatprep.subr.msk.bf16.mxu0 %vm2950_vm1, %v2459_v29 }
  0x39   : > { %2512 = vmatpush3.bf16.xpose.msk.msra.mxu1 %vm2950_vm1, %v2462_v34  ;;  %2464 = vmatpush3.bf16.xpose.msk.msra.mxu0 %vm2950_vm1, %v2462_v34 }
  0x3a   : > { %2515 = vmatprep.subr.msk.bf16.mxu1 %vm2950_vm1, %v2465_v35  ;;  %2467 = vmatprep.subr.msk.bf16.mxu0 %vm2950_vm1, %v2465_v35 }
  0x41   : > { %2518 = vmatpush3.bf16.xpose.msk.msra.mxu1 %vm2950_vm1, %v2468_v40  ;;  %2470 = vmatpush3.bf16.xpose.msk.msra.mxu0 %vm2950_vm1, %v2468_v40 }
  0x42   : > { %2521 = vmatprep.subr.msk.bf16.mxu1 %vm2950_vm1, %v2471_v41  ;;  %2473 = vmatprep.subr.msk.bf16.mxu0 %vm2950_vm1, %v2471_v41 }
  0x49   : > { %2524 = vmatpush3.bf16.xpose.msk.msra.mxu1 %vm2950_vm1, %v2474_v46  ;;  %2476 = vmatpush3.bf16.xpose.msk.msra.mxu0 %vm2950_vm1, %v2474_v46 }
  0x4a   : > { %2527 = vmatprep.subr.msk.bf16.mxu1 %vm2950_vm1, %v2477_v47  ;;  %2479 = vmatprep.subr.msk.bf16.mxu0 %vm2950_vm1, %v2477_v47 }
  0x51   : > { %2530 = vmatpush3.bf16.xpose.msk.msra.mxu1 %vm2950_vm1, %v2480_v50  ;;  %2482 = vmatpush3.bf16.xpose.msk.msra.mxu0 %vm2950_vm1, %v2480_v50 }
  0x52   : > { %2533 = vmatprep.subr.msk.bf16.mxu0 %vm2950_vm1, %v2958_v4 }
  0x58   : > { %2308 = vmatmul.mubr.msk.f32.vlgmr.msra.gmra.mrb[0].mxu1 %vm348_vm0, %v3003_v16  ;;  %2274 = vmatmul.mubr.msk.f32.vlgmr.msra.gmra.mrb[0].mxu0 %vm348_vm0, %v3007_v17  ;;  %v596_v17 = vld [vmem:[%s309_s22] sm:$0xff] }
  0x59   : > { %2536 = vmatpush3.bf16.xpose.msk.msra.mxu0 %vm2950_vm1, %v2963_v8  ;;  %896 = vmatprep.mubr.f32.mxu1 %v2869_v51 }
  0x5a   : > { %2539 = vmatprep.subr.msk.bf16.mxu0 %vm2950_vm1, %v2965_v9  ;;  %2341 = vmatprep.mubr.msk.f32.mxu0 %vm348_vm0, %v596_v17 }
  0x61   : > { %2542 = vmatpush3.bf16.xpose.msk.msra.mxu0 %vm2950_vm1, %v2995_v14 }
  0x62   : > { %2545 = vmatprep.subr.msk.bf16.mxu0 %vm2950_vm1, %v3001_v15 }
  0x69   : > { %2548 = vmatpush3.bf16.xpose.msk.msra.mxu0 %vm2950_vm1, %v2450_v22 }
  0x6a   : > { %2551 = vmatprep.subr.msk.bf16.mxu0 %vm2950_vm1, %v2453_v23 }
  0x71   : > { %2554 = vmatpush3.bf16.xpose.msk.msra.mxu0 %vm2950_vm1, %v2456_v28 }
  0x72   : > { %2557 = vmatprep.subr.msk.bf16.mxu0 %vm2950_vm1, %v2459_v29 }
  0x79   : > { %2560 = vmatpush3.bf16.xpose.msk.msra.mxu0 %vm2950_vm1, %v2462_v34 }
  0x7a   : > { %2563 = vmatprep.subr.msk.bf16.mxu0 %vm2950_vm1, %v2465_v35 }
  0x81   : > { %2566 = vmatpush3.bf16.xpose.msk.msra.mxu0 %vm2950_vm1, %v2468_v40 }
  0x82   : > { %2569 = vmatprep.subr.msk.bf16.mxu0 %vm2950_vm1, %v2471_v41 }
  0x89   : > { %2572 = vmatpush3.bf16.xpose.msk.msra.mxu0 %vm2950_vm1, %v2474_v46 }
  0x8a   : > { %2575 = vmatprep.subr.msk.bf16.mxu0 %vm2950_vm1, %v2477_v47 }
  0x91   : > { %2578 = vmatpush3.bf16.xpose.msk.msra.mxu0 %vm2950_vm1, %v2480_v50 }
  0x98   : > { %2342 = vmatmul.mubr.msk.f32.vlgmr.msra.gmra.mrb[2].mxu0 %vm348_vm0, %v596_v17 }
 0x12b   : > { %v591_v52 = vpop.f32.mrb[0].mxu1  ;;  %v514_v53 = vpop.f32.mrb[0].mxu0 }
 0x12c   : > { %671 = vxpose.xlu0.b32.start.end [1/1] (short) %v591_v52, 128  ;;  %v593_v54 = vpop.f32.mrb[1].mxu1  ;;  %v519_v55 = vmul.f32 0.35355338, %v514_v53  ;;  %v516_v56 = vpop.f32.mrb[1].mxu0 }
 0x12d   : > { %v520_v57 = vmul.f32 0.35355338, %v516_v56 }
 0x12f   : > { %832 = vmatprep.subr.mxu1 %v520_v57 }
 0x130   : > { %833 = vmatpush1.msra.mxu1 %v519_v55 }
 0x169   : > { %703 = vxpose.xlu0.b32.start.end [1/1] (short) %v593_v54, 128 }
 0x1ac   : > { %v687_v58 = vpop.trf.xlu0 }
 0x1ad   : > { %2167 = vmatmul.mubr.msk.f32.vlgmr.msra.gmra.mrb[2].mxu1 %vm735_vm2, %v687_v58 }
 0x1ae   : > { %902 = vmatprep.mubr.f32.mxu1 %v2869_v51 }
 0x1b0   : > { %v688_v59 = vpop.trf.xlu0 }
 0x1b1   : > { %2168 = vmatmul.mubr.msk.f32.gmra.mrb[4].mxu1 %vm735_vm2, %v688_v59 }
 0x1b2   : > { %908 = vmatprep.mubr.f32.mxu1 %v2869_v51 }
 0x1b4   : > { %v689_v60 = vpop.trf.xlu0 }
 0x1b5   : > { %2169 = vmatmul.mubr.msk.f32.gmra.mrb[6].mxu1 %vm735_vm2, %v689_v60 }
 0x1b6   : > { %914 = vmatprep.mubr.f32.mxu1 %v2869_v51 }
 0x1b8   : > { %v690_v61 = vpop.trf.xlu0 }
 0x1b9   : > { %2170 = vmatmul.mubr.msk.f32.gmra.mrb[8].mxu1 %vm735_vm2, %v690_v61 }
 0x1ba   : > { %920 = vmatprep.mubr.f32.mxu1 %v2869_v51 }
 0x1bc   : > { %v691_v62 = vpop.trf.xlu0 }
 0x1bd   : > { %2171 = vmatmul.mubr.msk.f32.gmra.mrb[10].mxu1 %vm735_vm2, %v691_v62 }
 0x1be   : > { %926 = vmatprep.mubr.f32.mxu1 %v2869_v51 }
 0x1c0   : > { %v692_v63 = vpop.trf.xlu0 }
 0x1c1   : > { %2172 = vmatmul.mubr.msk.f32.gmra.mrb[12].mxu1 %vm735_vm2, %v692_v63 }
 0x1c2   : > { %932 = vmatprep.mubr.f32.mxu1 %v2869_v51 }
 0x1c4   : > { %v693_v0 = vpop.trf.xlu0 }
 0x1c5   : > { %2173 = vmatmul.mubr.msk.f32.gmra.mrb[14].mxu1 %vm735_vm2, %v693_v0 }
 0x1c6   : > { %938 = vmatprep.mubr.f32.mxu1 %v2869_v51 }
 0x1c8   : > { %v694_v1 = vpop.trf.xlu0 }
 0x1c9   : > { %2174 = vmatmul.mubr.msk.f32.gmra.mrb[16].mxu1 %vm735_vm2, %v694_v1 }
 0x1ca   : > { %944 = vmatprep.mubr.f32.mxu1 %v2869_v51 }
 0x1cc   : > { %v695_v2 = vpop.trf.xlu0 }
 0x1cd   : > { %2175 = vmatmul.mubr.msk.f32.gmra.mrb[18].mxu1 %vm735_vm2, %v695_v2 }
 0x1ce   : > { %950 = vmatprep.mubr.f32.mxu1 %v2869_v51 }
 0x1d0   : > { %v696_v3 = vpop.trf.xlu0 }
 0x1d1   : > { %2176 = vmatmul.mubr.msk.f32.gmra.mrb[20].mxu1 %vm735_vm2, %v696_v3 }
 0x1d2   : > { %956 = vmatprep.mubr.f32.mxu1 %v2869_v51 }
 0x1d4   : > { %v697_v4 = vpop.trf.xlu0 }
 0x1d5   : > { %2177 = vmatmul.mubr.msk.f32.gmra.mrb[22].mxu1 %vm735_vm2, %v697_v4 }
 0x1d6   : > { %962 = vmatprep.mubr.f32.mxu1 %v2869_v51 }
 0x1d8   : > { %v698_v5 = vpop.trf.xlu0 }
 0x1d9   : > { %2178 = vmatmul.mubr.msk.f32.gmra.mrb[24].mxu1 %vm735_vm2, %v698_v5 }
 0x1da   : > { %968 = vmatprep.mubr.f32.mxu1 %v2869_v51 }
 0x1dc   : > { %v699_v6 = vpop.trf.xlu0 }
 0x1dd   : > { %2179 = vmatmul.mubr.msk.f32.gmra.mrb[26].mxu1 %vm735_vm2, %v699_v6 }
 0x1de   : > { %974 = vmatprep.mubr.f32.mxu1 %v2869_v51 }
 0x1e0   : > { %v700_v7 = vpop.trf.xlu0 }
 0x1e1   : > { %2180 = vmatmul.mubr.msk.f32.gmra.mrb[28].mxu1 %vm735_vm2, %v700_v7 }
 0x1e2   : > { %980 = vmatprep.mubr.f32.mxu1 %v2869_v51 }
 0x1e4   : > { %v701_v8 = vpop.trf.xlu0 }
 0x1e5   : > { %2181 = vmatmul.mubr.msk.f32.gmra.mrb[30].mxu1 %vm735_vm2, %v701_v8 }
 0x1e6   : > { %986 = vmatprep.mubr.f32.mxu1 %v2869_v51 }
 0x1e8   : > { %v702_v9 = vpop.trf.xlu0 }
 0x1e9   : > { %2182 = vmatmul.mubr.msk.f32.gmra.mrb[32].mxu1 %vm735_vm2, %v702_v9 }
 0x1ea   : > { %992 = vmatprep.mubr.f32.mxu1 %v2869_v51 }
 0x1ec   : > { %v719_v10 = vpop.trf.xlu0 }
 0x1ed   : > { %2183 = vmatmul.mubr.msk.f32.gmra.mrb[34].mxu1 %vm735_vm2, %v719_v10 }
 0x1ee   : > { %998 = vmatprep.mubr.f32.mxu1 %v2869_v51 }
 0x1f0   : > { %v720_v11 = vpop.trf.xlu0 }
 0x1f1   : > { %2184 = vmatmul.mubr.msk.f32.gmra.mrb[36].mxu1 %vm735_vm2, %v720_v11 }
 0x1f2   : > { %1004 = vmatprep.mubr.f32.mxu1 %v2869_v51 }
 0x1f4   : > { %v721_v12 = vpop.trf.xlu0 }
 0x1f5   : > { %2185 = vmatmul.mubr.msk.f32.gmra.mrb[38].mxu1 %vm735_vm2, %v721_v12 }
 0x1f6   : > { %1010 = vmatprep.mubr.f32.mxu1 %v2869_v51 }
 0x1f8   : > { %v722_v13 = vpop.trf.xlu0 }
 0x1f9   : > { %2186 = vmatmul.mubr.msk.f32.gmra.mrb[40].mxu1 %vm735_vm2, %v722_v13 }
 0x1fa   : > { %1016 = vmatprep.mubr.f32.mxu1 %v2869_v51 }
 0x1fc   : > { %v723_v14 = vpop.trf.xlu0 }
 0x1fd   : > { %2187 = vmatmul.mubr.msk.f32.gmra.mrb[42].mxu1 %vm735_vm2, %v723_v14 }
 0x1fe   : > { %1022 = vmatprep.mubr.f32.mxu1 %v2869_v51 }
 0x200   : > { %v724_v15 = vpop.trf.xlu0 }
 0x201   : > { %2188 = vmatmul.mubr.msk.f32.gmra.mrb[44].mxu1 %vm735_vm2, %v724_v15 }
 0x202   : > { %1028 = vmatprep.mubr.f32.mxu1 %v2869_v51 }
 0x204   : > { %v725_v16 = vpop.trf.xlu0 }
 0x205   : > { %2189 = vmatmul.mubr.msk.f32.gmra.mrb[46].mxu1 %vm735_vm2, %v725_v16 }
 0x206   : > { %1034 = vmatprep.mubr.f32.mxu1 %v2869_v51 }
 0x208   : > { %v726_v18 = vpop.trf.xlu0 }
 0x209   : > { %2190 = vmatmul.mubr.msk.f32.gmra.mrb[48].mxu1 %vm735_vm2, %v726_v18 }
 0x20a   : > { %1040 = vmatprep.mubr.f32.mxu1 %v2869_v51 }
 0x20c   : > { %v727_v19 = vpop.trf.xlu0 }
 0x20d   : > { %2191 = vmatmul.mubr.msk.f32.gmra.mrb[50].mxu1 %vm735_vm2, %v727_v19 }
 0x20e   : > { %1046 = vmatprep.mubr.f32.mxu1 %v2869_v51 }
 0x210   : > { %v728_v20 = vpop.trf.xlu0 }
 0x211   : > { %2192 = vmatmul.mubr.msk.f32.gmra.mrb[52].mxu1 %vm735_vm2, %v728_v20 }
 0x212   : > { %1052 = vmatprep.mubr.f32.mxu1 %v2869_v51 }
 0x214   : > { %v729_v21 = vpop.trf.xlu0 }
 0x215   : > { %2193 = vmatmul.mubr.msk.f32.gmra.mrb[54].mxu1 %vm735_vm2, %v729_v21 }
 0x216   : > { %1058 = vmatprep.mubr.f32.mxu1 %v2869_v51 }
 0x218   : > { %v730_v22 = vpop.trf.xlu0 }
 0x219   : > { %2194 = vmatmul.mubr.msk.f32.gmra.mrb[56].mxu1 %vm735_vm2, %v730_v22 }
 0x21a   : > { %1064 = vmatprep.mubr.f32.mxu1 %v2869_v51 }
 0x21c   : > { %v731_v23 = vpop.trf.xlu0 }
 0x21d   : > { %2195 = vmatmul.mubr.msk.f32.gmra.mrb[58].mxu1 %vm735_vm2, %v731_v23 }
 0x21e   : > { %1070 = vmatprep.mubr.f32.mxu1 %v2869_v51 }
 0x220   : > { %v732_v24 = vpop.trf.xlu0 }
 0x221   : > { %2196 = vmatmul.mubr.msk.f32.gmra.mrb[60].mxu1 %vm735_vm2, %v732_v24 }
 0x222   : > { %1076 = vmatprep.mubr.f32.mxu1 %v2869_v51 }
 0x224   : > { %v733_v25 = vpop.trf.xlu0 }
 0x225   : > { %2197 = vmatmul.mubr.msk.f32.gmra.mrb[62].mxu1 %vm735_vm2, %v733_v25 }
 0x226   : > { %1082 = vmatprep.mubr.f32.mxu1 %v2869_v51 }
 0x228   : > { %v734_v26 = vpop.trf.xlu0 }
 0x229   : > { %2198 = vmatmul.mubr.msk.f32.gmra.mrb[64].mxu1 %vm735_vm2, %v734_v26 }
 0x280   : > { %v3200_v27 = vpop.f32.mrb[2].mxu1 }
 0x281   : > { %v3202_v28 = vpop.f32.mrb[3].mxu1 }
 0x284   : > { %v3204_v29 = vpop.f32.mrb[4].mxu1 }
 0x285   : > { %v3206_v30 = vpop.f32.mrb[5].mxu1 }
 0x288   : > { %v3208_v31 = vpop.f32.mrb[6].mxu1 }
 0x289   : > { %v1089_v32 = vmax.f32 %v3200_v27, %v3208_v31  ;;  %v3212_v33 = vpop.f32.mrb[7].mxu1 }
 0x28a   : > { %v1126_v34 = vmax.f32 %v3202_v28, %v3212_v33 }
 0x28c   : > { %v3216_v35 = vpop.f32.mrb[8].mxu1 }
 0x28d   : > { %v1090_v36 = vmax.f32 %v3204_v29, %v3216_v35  ;;  %v3220_v37 = vpop.f32.mrb[9].mxu1 }
 0x28e   : > { %v1127_v38 = vmax.f32 %v3206_v30, %v3220_v37 }
 0x290   : > { %v3224_v39 = vpop.f32.mrb[10].mxu1 }
 0x291   : > { %v1091_v40 = vmax.f32 %v1089_v32, %v3224_v39  ;;  %v3227_v41 = vpop.f32.mrb[11].mxu1 }
 0x292   : > { %v1128_v42 = vmax.f32 %v1126_v34, %v3227_v41 }
 0x294   : > { %v3230_v43 = vpop.f32.mrb[12].mxu1 }
 0x295   : > { %v1092_v44 = vmax.f32 %v1090_v36, %v3230_v43  ;;  %v3233_v45 = vpop.f32.mrb[13].mxu1 }
 0x296   : > { %v1129_v46 = vmax.f32 %v1127_v38, %v3233_v45 }
 0x298   : > { %v3236_v47 = vpop.f32.mrb[14].mxu1 }
 0x299   : > { %v1093_v48 = vmax.f32 %v1091_v40, %v3236_v47  ;;  %v3239_v49 = vpop.f32.mrb[15].mxu1 }
 0x29a   : > { %v1130_v50 = vmax.f32 %v1128_v42, %v3239_v49 }
 0x29c   : > { %v3242_v51 = vpop.f32.mrb[16].mxu1 }
 0x29d   : > { %v1094_v52 = vmax.f32 %v1092_v44, %v3242_v51  ;;  %v3245_v53 = vpop.f32.mrb[17].mxu1 }
 0x29e   : > { %v1131_v54 = vmax.f32 %v1129_v46, %v3245_v53 }
 0x2a0   : > { %v3248_v55 = vpop.f32.mrb[18].mxu1 }
 0x2a1   : > { %v1095_v56 = vmax.f32 %v1093_v48, %v3248_v55  ;;  %v3251_v57 = vpop.f32.mrb[19].mxu1 }
 0x2a2   : > { %v1132_v58 = vmax.f32 %v1130_v50, %v3251_v57 }
 0x2a4   : > { %v3254_v59 = vpop.f32.mrb[20].mxu1 }
 0x2a5   : > { %v1096_v60 = vmax.f32 %v1094_v52, %v3254_v59  ;;  %v3257_v61 = vpop.f32.mrb[21].mxu1 }
 0x2a6   : > { %v1133_v62 = vmax.f32 %v1131_v54, %v3257_v61 }
 0x2a8   : > { %v3260_v63 = vpop.f32.mrb[22].mxu1 }
 0x2a9   : > { %v1097_v0 = vmax.f32 %v1095_v56, %v3260_v63  ;;  %v3263_v1 = vpop.f32.mrb[23].mxu1 }
 0x2aa   : > { %4047 = vst [vmem:[#allocation3_spill] sm:$0xff] %v3263_v1  ;;  %v1134_v2 = vmax.f32 %v1132_v58, %v3263_v1 }
 0x2ac   : > { %v3266_v3 = vpop.f32.mrb[24].mxu1 }
 0x2ad   : > { %v1098_v4 = vmax.f32 %v1096_v60, %v3266_v3  ;;  %v3269_v5 = vpop.f32.mrb[25].mxu1 }
 0x2ae   : > { %4048 = vst [vmem:[#allocation4_spill] sm:$0xff] %v3269_v5  ;;  %v1135_v6 = vmax.f32 %v1133_v62, %v3269_v5 }
 0x2b0   : > { %v3272_v7 = vpop.f32.mrb[26].mxu1 }
 0x2b1   : > { %v1099_v8 = vmax.f32 %v1097_v0, %v3272_v7  ;;  %v3275_v9 = vpop.f32.mrb[27].mxu1 }
 0x2b2   : > { %4049 = vst [vmem:[#allocation5_spill] sm:$0xff] %v3275_v9  ;;  %v1136_v10 = vmax.f32 %v1134_v2, %v3275_v9 }
 0x2b4   : > { %v3278_v11 = vpop.f32.mrb[28].mxu1 }
 0x2b5   : > { %v1100_v12 = vmax.f32 %v1098_v4, %v3278_v11  ;;  %v3281_v13 = vpop.f32.mrb[29].mxu1 }
 0x2b6   : > { %4050 = vst [vmem:[#allocation6_spill] sm:$0xff] %v3281_v13  ;;  %v1137_v14 = vmax.f32 %v1135_v6, %v3281_v13 }
 0x2b8   : > { %v3284_v15 = vpop.f32.mrb[30].mxu1 }
 0x2b9   : > { %v1101_v16 = vmax.f32 %v1099_v8, %v3284_v15  ;;  %v3287_v17 = vpop.f32.mrb[31].mxu1 }
 0x2ba   : > { %4051 = vst [vmem:[#allocation7_spill] sm:$0xff] %v3287_v17  ;;  %v1138_v18 = vmax.f32 %v1136_v10, %v3287_v17 }
 0x2bc   : > { %v3290_v19 = vpop.f32.mrb[32].mxu1 }
 0x2bd   : > { %v1102_v20 = vmax.f32 %v1100_v12, %v3290_v19  ;;  %v3293_v21 = vpop.f32.mrb[33].mxu1 }
 0x2be   : > { %4052 = vst [vmem:[#allocation8_spill] sm:$0xff] %v3293_v21  ;;  %v1139_v22 = vmax.f32 %v1137_v14, %v3293_v21 }
 0x2c0   : > { %v3296_v23 = vpop.f32.mrb[34].mxu1 }
 0x2c1   : > { %v1103_v24 = vmax.f32 %v1101_v16, %v3296_v23  ;;  %v3299_v25 = vpop.f32.mrb[35].mxu1 }
 0x2c2   : > { %4053 = vst [vmem:[#allocation9_spill] sm:$0xff] %v3299_v25  ;;  %v1140_v26 = vmax.f32 %v1138_v18, %v3299_v25  ;;  %v3392_v25 = vpop.f32.mrb[2].mxu0 }
 0x2c3   : > { %4069 = vst [vmem:[#allocation25_spill] sm:$0xff] %v3392_v25  ;;  %v668_v21 = vpop.f32.mrb[3].mxu0 }
 0x2c4   : > { %v3302_v32 = vpop.f32.mrb[36].mxu1  ;;  %1493 = vmatprep.mubr.f32.mxu0 %v668_v21 }
 0x2c5   : > { %v1104_v34 = vmax.f32 %v1102_v20, %v3302_v32  ;;  %v3305_v36 = vpop.f32.mrb[37].mxu1 }
 0x2c6   : > { %4054 = vst [vmem:[#allocation10_spill] sm:$0xff] %v3305_v36  ;;  %v1141_v38 = vmax.f32 %v1139_v22, %v3305_v36 }
 0x2c8   : > { %v3308_v40 = vpop.f32.mrb[38].mxu1 }
 0x2c9   : > { %v1105_v42 = vmax.f32 %v1103_v24, %v3308_v40  ;;  %v3311_v44 = vpop.f32.mrb[39].mxu1 }
 0x2ca   : > { %4055 = vst [vmem:[#allocation11_spill] sm:$0xff] %v3311_v44  ;;  %v1142_v46 = vmax.f32 %v1140_v26, %v3311_v44 }
 0x2cc   : > { %v3314_v48 = vpop.f32.mrb[40].mxu1 }
 0x2cd   : > { %v1106_v50 = vmax.f32 %v1104_v34, %v3314_v48  ;;  %v3317_v52 = vpop.f32.mrb[41].mxu1 }
 0x2ce   : > { %4056 = vst [vmem:[#allocation12_spill] sm:$0xff] %v3317_v52  ;;  %v1143_v54 = vmax.f32 %v1141_v38, %v3317_v52 }
 0x2d0   : > { %v3320_v56 = vpop.f32.mrb[42].mxu1 }
 0x2d1   : > { %v1107_v58 = vmax.f32 %v1105_v42, %v3320_v56  ;;  %v3323_v60 = vpop.f32.mrb[43].mxu1 }
 0x2d2   : > { %4057 = vst [vmem:[#allocation13_spill] sm:$0xff] %v3323_v60  ;;  %v1144_v62 = vmax.f32 %v1142_v46, %v3323_v60 }
 0x2d4   : > { %v3326_v0 = vpop.f32.mrb[44].mxu1 }
 0x2d5   : > { %v1108_v2 = vmax.f32 %v1106_v50, %v3326_v0  ;;  %v3329_v4 = vpop.f32.mrb[45].mxu1 }
 0x2d6   : > { %4058 = vst [vmem:[#allocation14_spill] sm:$0xff] %v3329_v4  ;;  %v1145_v6 = vmax.f32 %v1143_v54, %v3329_v4 }
 0x2d8   : > { %v3332_v8 = vpop.f32.mrb[46].mxu1 }
 0x2d9   : > { %v1109_v10 = vmax.f32 %v1107_v58, %v3332_v8  ;;  %v3335_v12 = vpop.f32.mrb[47].mxu1 }
 0x2da   : > { %4059 = vst [vmem:[#allocation15_spill] sm:$0xff] %v3335_v12  ;;  %v1146_v14 = vmax.f32 %v1144_v62, %v3335_v12 }
 0x2dc   : > { %v3338_v16 = vpop.f32.mrb[48].mxu1 }
 0x2dd   : > { %v1110_v18 = vmax.f32 %v1108_v2, %v3338_v16  ;;  %v3341_v20 = vpop.f32.mrb[49].mxu1 }
 0x2de   : > { %4060 = vst [vmem:[#allocation16_spill] sm:$0xff] %v3341_v20  ;;  %v1147_v22 = vmax.f32 %v1145_v6, %v3341_v20 }
 0x2e0   : > { %v3344_v24 = vpop.f32.mrb[50].mxu1 }
 0x2e1   : > { %v1111_v26 = vmax.f32 %v1109_v10, %v3344_v24  ;;  %v3347_v34 = vpop.f32.mrb[51].mxu1 }
 0x2e2   : > { %4061 = vst [vmem:[#allocation17_spill] sm:$0xff] %v3347_v34  ;;  %v1148_v38 = vmax.f32 %v1146_v14, %v3347_v34 }
 0x2e4   : > { %v3350_v42 = vpop.f32.mrb[52].mxu1 }
 0x2e5   : > { %v1112_v46 = vmax.f32 %v1110_v18, %v3350_v42  ;;  %v3353_v50 = vpop.f32.mrb[53].mxu1 }
 0x2e6   : > { %4062 = vst [vmem:[#allocation18_spill] sm:$0xff] %v3353_v50  ;;  %v1149_v54 = vmax.f32 %v1147_v22, %v3353_v50 }
 0x2e8   : > { %v3356_v58 = vpop.f32.mrb[54].mxu1 }
 0x2e9   : > { %v1113_v62 = vmax.f32 %v1111_v26, %v3356_v58  ;;  %v3359_v2 = vpop.f32.mrb[55].mxu1 }
 0x2ea   : > { %4063 = vst [vmem:[#allocation19_spill] sm:$0xff] %v3359_v2  ;;  %v1150_v6 = vmax.f32 %v1148_v38, %v3359_v2 }
 0x2ec   : > { %v3362_v10 = vpop.f32.mrb[56].mxu1 }
 0x2ed   : > { %v1114_v14 = vmax.f32 %v1112_v46, %v3362_v10  ;;  %v3365_v34 = vpop.f32.mrb[57].mxu1 }
 0x2ee   : > { %4064 = vst [vmem:[#allocation20_spill] sm:$0xff] %v3365_v34  ;;  %v1151_v18 = vmax.f32 %v1149_v54, %v3365_v34 }
 0x2f0   : > { %v3368_v20 = vpop.f32.mrb[58].mxu1 }
 0x2f1   : > { %v1115_v22 = vmax.f32 %v1113_v62, %v3368_v20  ;;  %v3371_v50 = vpop.f32.mrb[59].mxu1 }
 0x2f2   : > { %4065 = vst [vmem:[#allocation21_spill] sm:$0xff] %v3371_v50  ;;  %v1152_v26 = vmax.f32 %v1150_v6, %v3371_v50 }
 0x2f4   : > { %v3374_v12 = vpop.f32.mrb[60].mxu1 }
 0x2f5   : > { %v1116_v38 = vmax.f32 %v1114_v14, %v3374_v12  ;;  %v3377_v2 = vpop.f32.mrb[61].mxu1 }
 0x2f6   : > { %4066 = vst [vmem:[#allocation22_spill] sm:$0xff] %v3377_v2  ;;  %v1153_v46 = vmax.f32 %v1151_v18, %v3377_v2 }
 0x2f8   : > { %v3380_v4 = vpop.f32.mrb[62].mxu1 }
 0x2f9   : > { %v1117_v54 = vmax.f32 %v1115_v22, %v3380_v4  ;;  %v3383_v34 = vpop.f32.mrb[63].mxu1 }
 0x2fa   : > { %4067 = vst [vmem:[#allocation23_spill] sm:$0xff] %v3383_v34  ;;  %v1154_v62 = vmax.f32 %v1152_v26, %v3383_v34 }
 0x2fc   : > { %v3386_v60 = vpop.f32.mrb[64].mxu1 }
 0x2fd   : > { %v1118_v6 = vmax.f32 %v1116_v38, %v3386_v60  ;;  %v3389_v50 = vpop.f32.mrb[65].mxu1 }
 0x2fe   : > { %4068 = vst [vmem:[#allocation24_spill] sm:$0xff] %v3389_v50  ;;  %v1155_v14 = vmax.f32 %v1153_v46, %v3389_v50 }
 0x2ff   : > { %v1119_v52 = vmax.f32 %v1117_v54, %v1118_v6 }
 0x300   : > { %v1156_v44 = vmax.f32 %v1154_v62, %v1155_v14 }
 0x301   : > { %v1120_v36 = vrot.slane %v1119_v52, 4  ;;  %v4090_v25 = vld [vmem:[#allocation23_spill] sm:$0xff] }
 0x302   : > { %v1157_v18 = vrot.slane %v1156_v44, 4 }
 0x303   : > { %v1121_v2 = vmax.f32 %v1119_v52, %v1120_v36 }
 0x304   : > { %v1158_v22 = vmax.f32 %v1156_v44, %v1157_v18 }
 0x305   : > { %v1122_v17 = vrot.slane %v1121_v2, 2 }
 0x306   : > { %v1159_v26 = vrot.slane %v1158_v22, 2 }
 0x307   : > { %v1123_v34 = vmax.f32 %v1121_v2, %v1122_v17 }
 0x308   : > { %v1160_v13 = vmax.f32 %v1158_v22, %v1159_v26 }
 0x309   : > { %v1124_v9 = vrot.slane %v1123_v34, 1 }
 0x30a   : > { %v1161_v38 = vrot.slane %v1160_v13, 1 }
 0x30b   : > { %v3394_v5 = vmax.f32 %v1123_v34, %v1124_v9 }
 0x30c   : > { %v3396_v1 = vmax.f32 %v1160_v13, %v1161_v38 }
 0x30d   : > { %v1163_v46 = vsub.f32 %v3200_v27, %v3394_v5  ;;  %v1165_v36 = vsub.f32 %v3204_v29, %v3394_v5  ;;  %v1167_v44 = vsub.f32 %v3208_v31, %v3394_v5  ;;  %v1169_v21 = vsub.f32 %v3216_v35, %v3394_v5 }
 0x30e   : > { %v1171_v17 = vsub.f32 %v3224_v39, %v3394_v5  ;;  %v1173_v9 = vsub.f32 %v3230_v43, %v3394_v5  ;;  %v1175_v13 = vsub.f32 %v3236_v47, %v3394_v5  ;;  %v1177_v27 = vsub.f32 %v3242_v51, %v3394_v5 }
 0x30f   : > { %v1179_v29 = vsub.f32 %v3248_v55, %v3394_v5  ;;  %v1181_v31 = vsub.f32 %v3254_v59, %v3394_v5  ;;  %v1183_v35 = vsub.f32 %v3260_v63, %v3394_v5  ;;  %v1185_v39 = vsub.f32 %v3266_v3, %v3394_v5 }
 0x310   : > { %v1187_v43 = vsub.f32 %v3272_v7, %v3394_v5  ;;  %v1189_v47 = vsub.f32 %v3278_v11, %v3394_v5  ;;  %v1191_v51 = vsub.f32 %v3284_v15, %v3394_v5  ;;  %v1193_v55 = vsub.f32 %v3290_v19, %v3394_v5 }
 0x311   : > { %v1195_v59 = vsub.f32 %v3296_v23, %v3394_v5  ;;  %v1197_v63 = vsub.f32 %v3302_v32, %v3394_v5  ;;  %v1199_v3 = vsub.f32 %v3308_v40, %v3394_v5  ;;  %v1201_v7 = vsub.f32 %v3314_v48, %v3394_v5 }
 0x312   : > { %v1203_v11 = vsub.f32 %v3320_v56, %v3394_v5  ;;  %v1205_v15 = vsub.f32 %v3326_v0, %v3394_v5  ;;  %v1207_v19 = vsub.f32 %v3332_v8, %v3394_v5  ;;  %v1209_v23 = vsub.f32 %v3338_v16, %v3394_v5  ;;  %v4085_v56 = vld [vmem:[#allocation18_spill] sm:$0xff] }
 0x313   : > { %v1227_v34 = vmul.f32 1.442695, %v1163_v46  ;;  %v1231_v2 = vmul.f32 1.442695, %v1165_v36  ;;  %v1235_v54 = vmul.f32 1.442695, %v1167_v44 }
 0x314   : > { %v1239_v6 = vmul.f32 1.442695, %v1169_v21  ;;  %v1243_v18 = vmul.f32 1.442695, %v1171_v17  ;;  %v1247_v22 = vmul.f32 1.442695, %v1173_v9 }
 0x315   : > { %2697 = vpow2.f32 %v1227_v34  ;;  %v1251_v26 = vmul.f32 1.442695, %v1175_v13  ;;  %v1255_v38 = vmul.f32 1.442695, %v1177_v27  ;;  %v1259_v8 = vmul.f32 1.442695, %v1179_v29 }
 0x316   : > { %2699 = vpow2.f32 %v1231_v2  ;;  %v1263_v16 = vmul.f32 1.442695, %v1181_v31  ;;  %v1267_v46 = vmul.f32 1.442695, %v1183_v35  ;;  %v1271_v36 = vmul.f32 1.442695, %v1185_v39 }
 0x317   : > { %2701 = vpow2.f32 %v1235_v54  ;;  %v1275_v44 = vmul.f32 1.442695, %v1187_v43  ;;  %v1279_v62 = vmul.f32 1.442695, %v1189_v47  ;;  %v1283_v21 = vmul.f32 1.442695, %v1191_v51 }
 0x318   : > { %2703 = vpow2.f32 %v1239_v6  ;;  %v1287_v0 = vmul.f32 1.442695, %v1193_v55  ;;  %v1291_v14 = vmul.f32 1.442695, %v1195_v59  ;;  %v1295_v34 = vmul.f32 1.442695, %v1197_v63 }
 0x319   : > { %2705 = vpow2.f32 %v1243_v18  ;;  %v1299_v17 = vmul.f32 1.442695, %v1199_v3  ;;  %v1303_v9 = vmul.f32 1.442695, %v1201_v7  ;;  %v1307_v2 = vmul.f32 1.442695, %v1203_v11 }
 0x31a   : > { %2707 = vpow2.f32 %v1247_v22  ;;  %v3466_v13 = vmul.f32 1.442695, %v1205_v15  ;;  %v3468_v27 = vmul.f32 1.442695, %v1207_v19  ;;  %v3470_v29 = vmul.f32 1.442695, %v1209_v23 }
 0x31b   : > { %2709 = vpow2.f32 %v1251_v26  ;;  %v4070_v7 = vld [vmem:[#allocation3_spill] sm:$0xff]  ;;  %v4071_v15 = vld [vmem:[#allocation4_spill] sm:$0xff]  ;;  %v4073_v6 = vld [vmem:[#allocation6_spill] sm:$0xff] }
 0x31c   : > { %2711 = vpow2.f32 %v1255_v38  ;;  %v4074_v26 = vld [vmem:[#allocation7_spill] sm:$0xff]  ;;  %v4077_v3 = vld [vmem:[#allocation10_spill] sm:$0xff]  ;;  %v4079_v38 = vld [vmem:[#allocation12_spill] sm:$0xff] }
 0x31d   : > { %2713 = vpow2.f32 %v1259_v8  ;;  %v4078_v59 = vld [vmem:[#allocation11_spill] sm:$0xff]  ;;  %v4080_v51 = vld [vmem:[#allocation13_spill] sm:$0xff]  ;;  %v4081_v43 = vld [vmem:[#allocation14_spill] sm:$0xff] }
 0x31e   : > { %2715 = vpow2.f32 %v1263_v16  ;;  %v4072_v16 = vld [vmem:[#allocation5_spill] sm:$0xff]  ;;  %v4082_v18 = vld [vmem:[#allocation15_spill] sm:$0xff]  ;;  %v4083_v35 = vld [vmem:[#allocation16_spill] sm:$0xff] }
 0x31f   : > { %v3480_v47 = vpop.eup %2697  ;;  %2717 = vpow2.f32 %v1267_v46  ;;  %v4075_v46 = vld [vmem:[#allocation8_spill] sm:$0xff]  ;;  %v4089_v19 = vld [vmem:[#allocation22_spill] sm:$0xff] }
 0x320   : > { %v3488_v63 = vpop.eup %2699  ;;  %2719 = vpow2.f32 %v1271_v36  ;;  %v4084_v36 = vld [vmem:[#allocation17_spill] sm:$0xff] }
 0x321   : > { %v3496_v23 = vpop.eup %2701  ;;  %2721 = vpow2.f32 %v1275_v44  ;;  %v1355_v8 = vadd.f32 %v3488_v63, %v3480_v47  ;;  %v4076_v44 = vld [vmem:[#allocation9_spill] sm:$0xff] }
 0x322   : > { %v3504_v22 = vpop.eup %2703  ;;  %2723 = vpow2.f32 %v1279_v62  ;;  %v4087_v62 = vld [vmem:[#allocation20_spill] sm:$0xff] }
 0x323   : > { %v3512_v11 = vpop.eup %2705  ;;  %2725 = vpow2.f32 %v1283_v21  ;;  %v1356_v54 = vadd.f32 %v3496_v23, %v1355_v8 }
 0x324   : > { %v3519_v55 = vpop.eup %2707  ;;  %2727 = vpow2.f32 %v1287_v0 }
 0x325   : > { %v3527_v39 = vpop.eup %2709  ;;  %2729 = vpow2.f32 %v1291_v14  ;;  %v1357_v8 = vadd.f32 %v3504_v22, %v1356_v54 }
 0x326   : > { %v3534_v31 = vpop.eup %2711  ;;  %2731 = vpow2.f32 %v1295_v34 }
 0x327   : > { %v3542_v48 = vpop.eup %2713  ;;  %2733 = vpow2.f32 %v1299_v17  ;;  %v1358_v54 = vadd.f32 %v3512_v11, %v1357_v8  ;;  %v4091_v8 = vsub.f32 %v3344_v24, %v3394_v5 }
 0x328   : > { %v3549_v32 = vpop.eup %2715  ;;  %2735 = vpow2.f32 %v1303_v9  ;;  %v4092_v9 = vsub.f32 %v3350_v42, %v3394_v5 }
 0x329   : > { %v3557_v52 = vpop.eup %2717  ;;  %2737 = vpow2.f32 %v1307_v2  ;;  %v1323_v0 = vmul.f32 1.442695, %v4091_v8  ;;  %v1359_v34 = vadd.f32 %v3519_v55, %v1358_v54  ;;  %v4093_v2 = vsub.f32 %v3356_v58, %v3394_v5 }
 0x32a   : > { %v3563_v40 = vpop.eup %2719  ;;  %2739 = vpow2.f32 %v3466_v13  ;;  %v1327_v14 = vmul.f32 1.442695, %v4092_v9  ;;  %v4094_v13 = vsub.f32 %v3362_v10, %v3394_v5  ;;  %v4098_v10 = vsub.f32 %v3380_v4, %v3394_v5 }
 0x32b   : > { %v3569_v21 = vpop.eup %2721  ;;  %2741 = vpow2.f32 %v3468_v27  ;;  %v1331_v17 = vmul.f32 1.442695, %v4093_v2  ;;  %v1360_v24 = vadd.f32 %v3527_v39, %v1359_v34  ;;  %v4095_v27 = vsub.f32 %v3368_v20, %v3394_v5 }
 0x32c   : > { %v3576_v8 = vpop.eup %2723  ;;  %2743 = vpow2.f32 %v3470_v29  ;;  %v1335_v54 = vmul.f32 1.442695, %v4094_v13  ;;  %v4096_v34 = vsub.f32 %v3374_v12, %v3394_v5 }
 0x32d   : > { %v3582_v42 = vpop.eup %2725  ;;  %2745 = vpow2.f32 %v1323_v0  ;;  %v1339_v9 = vmul.f32 1.442695, %v4095_v27  ;;  %v1361_v58 = vadd.f32 %v3534_v31, %v1360_v24  ;;  %v1347_v0 = vmul.f32 1.442695, %v4098_v10 }
 0x32e   : > { %v3588_v2 = vpop.eup %2727  ;;  %2747 = vpow2.f32 %v1327_v14  ;;  %v1343_v29 = vmul.f32 1.442695, %v4096_v34  ;;  %v4099_v24 = vsub.f32 %v3386_v60, %v3394_v5  ;;  %v4102_v5 = vsub.f32 %v3212_v33, %v3396_v1 }
 0x32f   : > { %v3593_v50 = vpop.eup %2729  ;;  %2749 = vpow2.f32 %v1331_v17  ;;  %v1362_v13 = vadd.f32 %v3542_v48, %v1361_v58  ;;  %v4100_v17 = vsub.f32 %v3202_v28, %v3396_v1  ;;  %v4101_v58 = vsub.f32 %v3206_v30, %v3396_v1 }
 0x330   : > { %4097 = vst [vmem:[#allocation3_spill] sm:$0xff] %v3593_v50  ;;  %v3599_v20 = vpop.eup %2731  ;;  %2751 = vpow2.f32 %v1335_v54  ;;  %v1351_v14 = vmul.f32 1.442695, %v4099_v24  ;;  %v1237_v60 = vmul.f32 1.442695, %v4102_v5  ;;  %v4103_v28 = vsub.f32 %v3220_v37, %v3396_v1 }
 0x331   : > { %v3604_v27 = vpop.eup %2733  ;;  %2753 = vpow2.f32 %v1339_v9  ;;  %v1363_v12 = vadd.f32 %v3549_v32, %v1362_v13  ;;  %v1229_v34 = vmul.f32 1.442695, %v4100_v17  ;;  %v1233_v54 = vmul.f32 1.442695, %v4101_v58 }
 0x332   : > { %v3610_v4 = vpop.eup %2735  ;;  %2755 = vpow2.f32 %v1343_v29  ;;  %v1241_v13 = vmul.f32 1.442695, %v4103_v28  ;;  %v4104_v29 = vsub.f32 %v3227_v41, %v3396_v1  ;;  %v4105_v30 = vsub.f32 %v3233_v45, %v3396_v1 }
 0x333   : > { %v3618_v10 = vpop.eup %2737  ;;  %2757 = vpow2.f32 %v1347_v0  ;;  %v1364_v9 = vadd.f32 %v3557_v52, %v1363_v12  ;;  %v4106_v0 = vsub.f32 %v3239_v49, %v3396_v1  ;;  %v4107_v12 = vsub.f32 %v3245_v53, %v3396_v1 }
 0x334   : > { %v1245_v24 = vmul.f32 1.442695, %v4104_v29  ;;  %v3627_v17 = vpop.eup %2739  ;;  %2759 = vpow2.f32 %v1351_v14  ;;  %v1249_v33 = vmul.f32 1.442695, %v4105_v30  ;;  %v4108_v14 = vsub.f32 %v3251_v57, %v3396_v1 }
 0x335   : > { %v1253_v58 = vmul.f32 1.442695, %v4106_v0  ;;  %v1257_v37 = vmul.f32 1.442695, %v4107_v12  ;;  %v3638_v5 = vpop.eup %2741  ;;  %v1365_v41 = vadd.f32 %v3563_v40, %v1364_v9  ;;  %2761 = vpow2.f32 %v1229_v34 }
 0x336   : > { %v1261_v28 = vmul.f32 1.442695, %v4108_v14  ;;  %v4109_v45 = vsub.f32 %v3257_v61, %v3396_v1  ;;  %v3647_v30 = vpop.eup %2743  ;;  %2763 = vpow2.f32 %v1233_v54 }
 0x337   : > { %v3655_v9 = vpop.eup %2745  ;;  %v1366_v57 = vadd.f32 %v3569_v21, %v1365_v41  ;;  %2765 = vpow2.f32 %v1237_v60 }
 0x338   : > { %v1265_v29 = vmul.f32 1.442695, %v4109_v45  ;;  %v3662_v0 = vpop.eup %2747  ;;  %2767 = vpow2.f32 %v1241_v13  ;;  %v4110_v13 = vsub.f32 %v4070_v7, %v3396_v1  ;;  %v4111_v45 = vsub.f32 %v4071_v15, %v3396_v1 }
 0x339   : > { %v3670_v41 = vpop.eup %2749  ;;  %v1367_v60 = vadd.f32 %v3576_v8, %v1366_v57  ;;  %2769 = vpow2.f32 %v1245_v24 }
 0x33a   : > { %v3677_v61 = vpop.eup %2751  ;;  %2771 = vpow2.f32 %v1249_v33  ;;  %v1269_v54 = vmul.f32 1.442695, %v4110_v13  ;;  %v1273_v14 = vmul.f32 1.442695, %v4111_v45 }
 0x33b   : > { %v3685_v57 = vpop.eup %2753  ;;  %v1368_v24 = vadd.f32 %v3582_v42, %v1367_v60  ;;  %2773 = vpow2.f32 %v1253_v58  ;;  %v4112_v58 = vsub.f32 %v4072_v16, %v3396_v1  ;;  %v4117_v16 = vsub.f32 %v4077_v3, %v3396_v1 }
 0x33c   : > { %v3693_v34 = vpop.eup %2755  ;;  %2775 = vpow2.f32 %v1257_v37  ;;  %v4113_v37 = vsub.f32 %v4073_v6, %v3396_v1  ;;  %v4116_v6 = vsub.f32 %v4076_v44, %v3396_v1  ;;  %v4120_v3 = vsub.f32 %v4080_v51, %v3396_v1 }
 0x33d   : > { %v3698_v12 = vpop.eup %2757  ;;  %v1369_v53 = vadd.f32 %v3588_v2, %v1368_v24  ;;  %2777 = vpow2.f32 %v1261_v28  ;;  %v1277_v7 = vmul.f32 1.442695, %v4112_v58  ;;  %v4114_v28 = vsub.f32 %v4074_v26, %v3396_v1 }
 0x33e   : > { %v3706_v13 = vpop.eup %2759  ;;  %2779 = vpow2.f32 %v1265_v29  ;;  %v1281_v15 = vmul.f32 1.442695, %v4113_v37  ;;  %v4115_v29 = vsub.f32 %v4075_v46, %v3396_v1  ;;  %v1293_v37 = vmul.f32 1.442695, %v4116_v6 }
 0x33f   : > { %v2762_v45 = vpop.eup %2761  ;;  %v1370_v33 = vadd.f32 %v3593_v50, %v1369_v53  ;;  %2781 = vpow2.f32 %v1269_v54  ;;  %v1285_v24 = vmul.f32 1.442695, %v4114_v28  ;;  %v4118_v46 = vsub.f32 %v4078_v59, %v3396_v1 }
 0x340   : > { %v2764_v58 = vpop.eup %2763  ;;  %2783 = vpow2.f32 %v1273_v14  ;;  %v1289_v60 = vmul.f32 1.442695, %v4115_v29  ;;  %v1297_v14 = vmul.f32 1.442695, %v4117_v16  ;;  %v1309_v16 = vmul.f32 1.442695, %v4120_v3 }
 0x341   : > { %v2766_v49 = vpop.eup %2765  ;;  %v1371_v53 = vadd.f32 %v3599_v20, %v1370_v33  ;;  %2785 = vpow2.f32 %v1277_v7  ;;  %v1392_v54 = vadd.f32 %v2764_v58, %v2762_v45  ;;  %v2579_v26 = vpack.c.bf16 %v2764_v58, %v2762_v45 }
 0x342   : > { %v2768_v28 = vpop.eup %2767  ;;  %2787 = vpow2.f32 %v1281_v15  ;;  %v1301_v29 = vmul.f32 1.442695, %v4118_v46  ;;  %v4119_v15 = vsub.f32 %v4079_v38, %v3396_v1  ;;  %v4121_v59 = vpack.c.bf16 %v3488_v63, %v3480_v47 }
 0x343   : > { %v2770_v50 = vpop.eup %2769  ;;  %v1372_v44 = vadd.f32 %v3604_v27, %v1371_v53  ;;  %2789 = vpow2.f32 %v1285_v24  ;;  %v1393_v6 = vadd.f32 %v2766_v49, %v1392_v54  ;;  %2580 = vmatprep.subr.bf16.mxu0 %v2579_v26  ;;  %v2583_v33 = vpack.c.bf16 %v2768_v28, %v2766_v49 }
 0x344   : > { %v2772_v7 = vpop.eup %2771  ;;  %2791 = vpow2.f32 %v1289_v60  ;;  %v1305_v45 = vmul.f32 1.442695, %v4119_v15  ;;  %2582 = vmatpush1.bf16.msra.mxu0 %v4121_v59  ;;  %v4122_v38 = vsub.f32 %v4081_v43, %v3396_v1  ;;  %v4123_v51 = vsub.f32 %v4082_v18, %v3396_v1  ;;  %v4128_v59 = vld [vmem:[#allocation19_spill] sm:$0xff] }
 0x345   : > { %v2774_v58 = vpop.eup %2773  ;;  %v1373_v24 = vadd.f32 %v3610_v4, %v1372_v44  ;;  %2793 = vpow2.f32 %v1293_v37  ;;  %v1394_v53 = vadd.f32 %v2768_v28, %v1393_v6  ;;  %2584 = vmatprep.subr.bf16.mxu0 %v2583_v33  ;;  %v2587_v49 = vpack.c.bf16 %v2772_v7, %v2770_v50 }
 0x346   : > { %v2776_v60 = vpop.eup %2775  ;;  %2795 = vpow2.f32 %v1297_v14  ;;  %v1313_v54 = vmul.f32 1.442695, %v4122_v38  ;;  %v1317_v26 = vmul.f32 1.442695, %v4123_v51  ;;  %v4124_v28 = vsub.f32 %v4083_v35, %v3396_v1 }
 0x347   : > { %v2778_v46 = vpop.eup %2777  ;;  %v1374_v47 = vadd.f32 %v3618_v10, %v1373_v24  ;;  %2797 = vpow2.f32 %v1301_v29  ;;  %v1395_v63 = vadd.f32 %v2770_v50, %v1394_v53  ;;  %v2591_v44 = vpack.c.bf16 %v2776_v60, %v2774_v58 }
 0x348   : > { %v2780_v37 = vpop.eup %2779  ;;  %2799 = vpow2.f32 %v1305_v45  ;;  %v1321_v14 = vmul.f32 1.442695, %v4124_v28  ;;  %v4125_v43 = vsub.f32 %v4084_v36, %v3396_v1  ;;  %v4126_v18 = vpack.c.bf16 %v3504_v22, %v3496_v23 }
 0x349   : > { %v2782_v33 = vpop.eup %2781  ;;  %v1375_v15 = vadd.f32 %v3627_v17, %v1374_v47  ;;  %2801 = vpow2.f32 %v1309_v16  ;;  %v1396_v50 = vadd.f32 %v2772_v7, %v1395_v63  ;;  %v2595_v29 = vpack.c.bf16 %v2780_v37, %v2778_v46 }
 0x34a   : > { %v1325_v6 = vmul.f32 1.442695, %v4125_v43  ;;  %2586 = vmatpush1.bf16.msra.mxu0 %v4126_v18  ;;  %v2784_v45 = vpop.eup %2783  ;;  %2803 = vpow2.f32 %v1313_v54  ;;  %v4127_v35 = vsub.f32 %v4085_v56, %v3396_v1  ;;  %v4129_v36 = vsub.f32 %v4128_v59, %v3396_v1  ;;  %v4131_v54 = vld [vmem:[#allocation21_spill] sm:$0xff] }
 0x34b   : > { %2588 = vmatprep.subr.bf16.mxu0 %v2587_v49  ;;  %v2786_v53 = vpop.eup %2785  ;;  %v1376_v23 = vadd.f32 %v3638_v5, %v1375_v15  ;;  %2805 = vpow2.f32 %v1317_v26  ;;  %v1397_v22 = vadd.f32 %v2774_v58, %v1396_v50  ;;  %v2599_v38 = vpack.c.bf16 %v2784_v45, %v2782_v33 }
 0x34c   : > { %v1329_v3 = vmul.f32 1.442695, %v4127_v35  ;;  %v1333_v24 = vmul.f32 1.442695, %v4129_v36  ;;  %v2788_v16 = vpop.eup %2787  ;;  %2807 = vpow2.f32 %v1321_v14  ;;  %v4130_v7 = vsub.f32 %v4087_v62, %v3396_v1 }
 0x34d   : > { %v4132_v56 = vsub.f32 %v4131_v54, %v3396_v1  ;;  %v4133_v47 = vpack.c.bf16 %v3519_v55, %v3512_v11  ;;  %v2790_v63 = vpop.eup %2789  ;;  %v1377_v28 = vadd.f32 %v3647_v30, %v1376_v23  ;;  %2809 = vpow2.f32 %v1325_v6 }
 0x34e   : > { %v1337_v49 = vmul.f32 1.442695, %v4130_v7  ;;  %v1398_v58 = vadd.f32 %v2776_v60, %v1397_v22  ;;  %v2603_v26 = vpack.c.bf16 %v2788_v16, %v2786_v53  ;;  %v2792_v14 = vpop.eup %2791  ;;  %2811 = vpow2.f32 %v1329_v3  ;;  %v4136_v60 = vld [vmem:[#allocation24_spill] sm:$0xff] }
 0x34f   : > { %v1341_v51 = vmul.f32 1.442695, %v4132_v56  ;;  %2590 = vmatpush1.bf16.msra.mxu0 %v4133_v47  ;;  %v4134_v62 = vsub.f32 %v4089_v19, %v3396_v1  ;;  %v4135_v18 = vsub.f32 %v4090_v25, %v3396_v1  ;;  %v2794_v50 = vpop.eup %2793  ;;  %v1378_v55 = vadd.f32 %v3655_v9, %v1377_v28 }
 0x350   : > { %2592 = vmatprep.subr.bf16.mxu0 %v2591_v44  ;;  %2813 = vpow2.f32 %v1333_v24  ;;  %v1399_v11 = vadd.f32 %v2778_v46, %v1398_v58  ;;  %v2607_v35 = vpack.c.bf16 %v2792_v14, %v2790_v63  ;;  %v2796_v6 = vpop.eup %2795  ;;  %v4137_v44 = vsub.f32 %v4136_v60, %v3396_v1 }
 0x351   : > { %v1345_v43 = vmul.f32 1.442695, %v4134_v62  ;;  %v1349_v15 = vmul.f32 1.442695, %v4135_v18  ;;  %2815 = vpow2.f32 %v1337_v49  ;;  %v4138_v19 = vpack.c.bf16 %v3534_v31, %v3527_v39  ;;  %v2798_v59 = vpop.eup %2797 }
 0x352   : > { %v1353_v3 = vmul.f32 1.442695, %v4137_v44  ;;  %v1379_v25 = vadd.f32 %v3662_v0, %v1378_v55  ;;  %2817 = vpow2.f32 %v1341_v51  ;;  %v1400_v36 = vadd.f32 %v2780_v37, %v1399_v11  ;;  %v2800_v24 = vpop.eup %2799 }
 0x353   : > { %2594 = vmatpush1.bf16.msra.mxu0 %v4138_v19  ;;  %v2611_v23 = vpack.c.bf16 %v2796_v6, %v2794_v50  ;;  %2819 = vpow2.f32 %v1345_v43  ;;  %v2802_v46 = vpop.eup %2801  ;;  %v2615_v1 = vpack.c.bf16 %v2800_v24, %v2798_v59  ;;  %v4139_v31 = vpack.c.bf16 %v3549_v32, %v3542_v48 }
 0x354   : > { %2596 = vmatprep.subr.bf16.mxu0 %v2595_v29  ;;  %v1380_v22 = vadd.f32 %v3670_v41, %v1379_v25  ;;  %2821 = vpow2.f32 %v1349_v15  ;;  %v1401_v7 = vadd.f32 %v2782_v33, %v1400_v36  ;;  %v2804_v49 = vpop.eup %2803  ;;  %v4140_v62 = vpack.c.bf16 %v3563_v40, %v3557_v52 }
 0x355   : > { %2823 = vpow2.f32 %v1353_v3  ;;  %v2806_v39 = vpop.eup %2805  ;;  %v2619_v29 = vpack.c.bf16 %v2804_v49, %v2802_v46  ;;  %v4142_v25 = vpack.c.bf16 %v3588_v2, %v3582_v42  ;;  %v4146_v42 = vpack.c.bf16 %v3627_v17, %v3618_v10 }
 0x356   : > { %v1381_v54 = vadd.f32 %v3677_v61, %v1380_v22  ;;  %v1402_v37 = vadd.f32 %v2784_v45, %v1401_v7  ;;  %v2808_v56 = vpop.eup %2807  ;;  %v4143_v22 = vld [vmem:[#allocation3_spill] sm:$0xff]  ;;  %v4149_v10 = vpack.c.bf16 %v3677_v61, %v3670_v41 }
 0x357   : > { %2598 = vmatpush1.bf16.msra.mxu0 %v4139_v31  ;;  %v2810_v51 = vpop.eup %2809  ;;  %v2623_v58 = vpack.c.bf16 %v2808_v56, %v2806_v39 }
 0x358   : > { %2600 = vmatprep.subr.bf16.mxu0 %v2599_v38  ;;  %v1382_v47 = vadd.f32 %v3685_v57, %v1381_v54  ;;  %v1403_v28 = vadd.f32 %v2786_v53, %v1402_v37  ;;  %v2812_v33 = vpop.eup %2811  ;;  %v4141_v53 = vpack.c.bf16 %v3576_v8, %v3569_v21  ;;  %v4144_v21 = vpack.c.bf16 %v3599_v20, %v4143_v22 }
 0x359   : > { %v2627_v18 = vpack.c.bf16 %v2812_v33, %v2810_v51  ;;  %v4147_v20 = vpack.c.bf16 %v3647_v30, %v3638_v5  ;;  %v4150_v5 = vpack.c.bf16 %v3693_v34, %v3685_v57 }
 0x35a   : > { %v2814_v43 = vpop.eup %2813  ;;  %v1383_v32 = vadd.f32 %v3693_v34, %v1382_v47  ;;  %v1404_v48 = vadd.f32 %v2788_v16, %v1403_v28 }
 0x35b   : > { %2602 = vmatpush1.bf16.msra.mxu0 %v4140_v62  ;;  %v2816_v45 = vpop.eup %2815 }
 0x35c   : > { %2604 = vmatprep.subr.bf16.mxu0 %v2603_v26  ;;  %v2818_v38 = vpop.eup %2817  ;;  %v1384_v15 = vadd.f32 %v3698_v12, %v1383_v32  ;;  %v1405_v55 = vadd.f32 %v2790_v63, %v1404_v48  ;;  %v2631_v11 = vpack.c.bf16 %v2816_v45, %v2814_v43  ;;  %v1524_v48 = vld [vmem:[%s3998_s4] sm:$0xff] (!%p2202_p7) }
 0x35d   : > { %v2820_v60 = vpop.eup %2819 }
 0x35e   : > { %v2822_v44 = vpop.eup %2821  ;;  %v1385_v40 = vadd.f32 %v3706_v13, %v1384_v15  ;;  %v1406_v52 = vadd.f32 %v2792_v14, %v1405_v55  ;;  %v2635_v3 = vpack.c.bf16 %v2820_v60, %v2818_v38  ;;  %v4145_v14 = vpack.c.bf16 %v3610_v4, %v3604_v27 }
 0x35f   : > { %2606 = vmatpush1.bf16.msra.mxu0 %v4141_v53  ;;  %v2824_v16 = vpop.eup %2823  ;;  %v4148_v27 = vpack.c.bf16 %v3662_v0, %v3655_v9  ;;  %v4151_v9 = vpack.c.bf16 %v3706_v13, %v3698_v12  ;;  %v4152_v0 = vld [vmem:[#allocation25_spill] sm:$0xff] }
 0x360   : > { %2608 = vmatprep.subr.bf16.mxu0 %v2607_v35  ;;  %v1407_v26 = vadd.f32 %v2794_v50, %v1406_v52  ;;  %v2639_v19 = vpack.c.bf16 %v2824_v16, %v2822_v44 }
 0x362   : > { %v1408_v63 = vadd.f32 %v2796_v6, %v1407_v26 }
 0x363   : > { %2610 = vmatpush1.bf16.msra.mxu0 %v4142_v25 }
 0x364   : > { %2612 = vmatprep.subr.bf16.mxu0 %v2611_v23  ;;  %v1409_v36 = vadd.f32 %v2798_v59, %v1408_v63 }
 0x366   : > { %v1410_v8 = vadd.f32 %v2800_v24, %v1409_v36 }
 0x367   : > { %2614 = vmatpush1.bf16.msra.mxu0 %v4144_v21 }
 0x368   : > { %2616 = vmatprep.subr.bf16.mxu0 %v2615_v1  ;;  %v1411_v7 = vadd.f32 %v2802_v46, %v1410_v8  ;;  %v1386_v1 = vrot.slane %v1385_v40, 4 }
 0x36a   : > { %v1412_v50 = vadd.f32 %v2804_v49, %v1411_v7  ;;  %v1387_v61 = vadd.f32 %v1386_v1, %v1385_v40  ;;  %v3881_v1 = vld [vmem:[%s3999_s5] ss:$0 sm:$0xff] (!%p2202_p7) }
 0x36b   : > { %2618 = vmatpush1.bf16.msra.mxu0 %v4145_v14 }
 0x36c   : > { %2620 = vmatprep.subr.bf16.mxu0 %v2619_v29  ;;  %v1413_v35 = vadd.f32 %v2806_v39, %v1412_v50  ;;  %v1388_v31 = vrot.slane %v1387_v61, 2 }
 0x36e   : > { %v1414_v2 = vadd.f32 %v2808_v56, %v1413_v35  ;;  %v1389_v54 = vadd.f32 %v1388_v31, %v1387_v61 }
 0x36f   : > { %2622 = vmatpush1.bf16.msra.mxu0 %v4146_v42 }
 0x370   : > { %2624 = vmatprep.subr.bf16.mxu0 %v2623_v58  ;;  %v1415_v6 = vadd.f32 %v2810_v51, %v1414_v2  ;;  %v1390_v29 = vrot.slane %v1389_v54, 1 }
 0x372   : > { %v1416_v59 = vadd.f32 %v2812_v33, %v1415_v6  ;;  %v1391_v57 = vadd.f32 %v1390_v29, %v1389_v54 }
 0x373   : > { %2626 = vmatpush1.bf16.msra.mxu0 %v4147_v20 }
 0x374   : > { %2628 = vmatprep.subr.bf16.mxu0 %v2627_v18  ;;  %v1417_v23 = vadd.f32 %v2814_v43, %v1416_v59  ;;  %2825 = vrcp.f32 %v1391_v57  ;;  %v1525_v18 = vld [vmem:[%s3998_s4 + $0x8] sm:$0xff] (!%p2202_p7) }
 0x375   : > { %v2643_v15 = vpack.c.bf16 (!%p2202_p7), %v1525_v18, %v1524_v48 }
 0x376   : > { %v1418_v4 = vadd.f32 %v2816_v45, %v1417_v23  ;;  %v1526_v45 = vld [vmem:[%s3998_s4 + $0x10] sm:$0xff] (!%p2202_p7) }
 0x377   : > { %2630 = vmatpush1.bf16.msra.mxu0 %v4148_v27  ;;  %2651 = vmatprep.subr.bf16.mxu1 (!%p2202_p7), %v2643_v15 }
 0x378   : > { %2632 = vmatprep.subr.bf16.mxu0 %v2631_v11  ;;  %v1419_v24 = vadd.f32 %v2818_v38, %v1418_v4  ;;  %v1527_v38 = vld [vmem:[%s3998_s4 + $0x18] sm:$0xff] (!%p2202_p7)  ;;  %2653 = vmatpush3.bf16.msra.mxu1 (!%p2202_p7), %v2643_v15 }
 0x379   : > { %v2647_v55 = vpack.c.bf16 (!%p2202_p7), %v1527_v38, %v1526_v45 }
 0x37a   : > { %v1420_v17 = vadd.f32 %v2820_v60, %v1419_v24 }
 0x37b   : > { %2634 = vmatpush1.bf16.msra.mxu0 %v4149_v10  ;;  %2652 = vmatprep.subr.bf16.mxu1 (!%p2202_p7), %v2647_v55 }
 0x37c   : > { %2636 = vmatprep.subr.bf16.mxu0 %v2635_v3  ;;  %v1421_v46 = vadd.f32 %v2822_v44, %v1420_v17  ;;  %2654 = vmatpush3.bf16.msra.mxu1 (!%p2202_p7), %v2647_v55 }
 0x37e   : > { %v1422_v30 = vadd.f32 %v2824_v16, %v1421_v46  ;;  %v2826_v12 = vpop.eup %2825 }
 0x37f   : > { %2638 = vmatpush1.bf16.msra.mxu0 %v4150_v5 }
 0x380   : > { %2640 = vmatprep.subr.bf16.mxu0 %v2639_v19  ;;  %v1423_v49 = vrot.slane %v1422_v30, 4 }
 0x382   : > { %v1424_v41 = vadd.f32 %v1423_v49, %v1422_v30 }
 0x383   : > { %2642 = vmatpush1.bf16.msra.mxu0 %v4151_v9 }
 0x384   : > { %v1425_v39 = vrot.slane %v1424_v41, 2  ;;  %2644 = vmatprep.subr.bf16.mxu0 (!%p2202_p7), %v2643_v15 }
 0x386   : > { %1494 = vmatmul.mubr.f32.vlgmr.msra.gmra.mrb[4].mxu0 %v4152_v0  ;;  %v1426_v37 = vadd.f32 %v1425_v39, %v1424_v41 }
 0x387   : > { %2646 = vmatpush3.bf16.msra.mxu0 (!%p2202_p7), %v2643_v15 }
 0x388   : > { %v1427_v34 = vrot.slane %v1426_v37, 1  ;;  %2648 = vmatprep.subr.bf16.mxu0 (!%p2202_p7), %v2647_v55 }
 0x38a   : > { %v1428_v56 = vadd.f32 %v1427_v34, %v1426_v37 }
 0x38b   : > { %2650 = vmatpush3.bf16.msra.mxu0 (!%p2202_p7), %v2647_v55 }
 0x38c   : > { %2827 = vrcp.f32 %v1428_v56 }
 0x396   : > { %v2828_v51 = vpop.eup %2827 }
 0x457   : > { %1515 = sbr.rel (%p2202_p7) target bundleno = 1530 (0x5fa), region = 48 }
 0x459   : > { %v1495_v13 = vpop.f32.mrb[4].mxu0 }
 0x45a   : > { %v1503_v47 = vmul.f32 %v2826_v12, %v1495_v13  ;;  %v1497_v28 = vpop.f32.mrb[5].mxu0 }
 0x45b   : > { %v1504_v58 = vmul.f32 %v2828_v51, %v1497_v28 }
 0x45c   : > { %1510 = vst [vmem:[%s1509_s7] sm:$0xff] %v1503_v47 }
 0x45d   : > { %1511 = vst [vmem:[%s1509_s7 + $0x8] sm:$0xff] %v1504_v58 }
 0x464   : > { %v1517_v33 = vld [vmem:[#allocation2 + $0x8] sm:$0xff]  ;;  %v1516_v62 = vld [vmem:[#allocation2] sm:$0xff]  ;;  %v1519_v43 = vld [vmem:[#allocation2 + $0x18] sm:$0xff] }
 0x465   : > { %1567 = vxpose.xlu1.b32.start [1/4] (short) %v1517_v33, 128  ;;  %1535 = vxpose.xlu0.b32.start [1/4] (short) %v1516_v62, 128  ;;  %v1518_v32 = vld [vmem:[#allocation2 + $0x10] sm:$0xff]  ;;  %v1521_v11 = vld [vmem:[#allocation2 + $0x28] sm:$0xff]  ;;  %v1520_v60 = vld [vmem:[#allocation2 + $0x20] sm:$0xff] }
 0x466   : > { %v1523_v53 = vld [vmem:[#allocation2 + $0x38] sm:$0xff]  ;;  %v1522_v44 = vld [vmem:[#allocation2 + $0x30] sm:$0xff] }
 0x469   : > { %1568 = vxpose.xlu1.b32.cont [2/4] (short) %v1519_v43, 128  ;;  %1536 = vxpose.xlu0.b32.cont [2/4] (short) %v1518_v32, 128 }
 0x46d   : > { %1569 = vxpose.xlu1.b32.cont [3/4] (short) %v1521_v11, 128  ;;  %1537 = vxpose.xlu0.b32.cont [3/4] (short) %v1520_v60, 128 }
 0x471   : > { %1570 = vxpose.xlu1.b32.end [4/4] (short) %v1523_v53, 128  ;;  %1538 = vxpose.xlu0.b32.end [4/4] (short) %v1522_v44, 128 }
 0x4e5   : > { %v1583_v40 = vpop.trf.xlu1  ;;  %v1551_v52 = vpop.trf.xlu0 }
 0x4e6   : > { %2387 = vmatprep.mubr.msk.f32.mxu0 %vm348_vm0, %v1551_v52  ;;  %2411 = vmatprep.mubr.msk.f32.mxu1 %vm348_vm0, %v1583_v40 }
 0x4e9   : > { %v1584_v3 = vpop.trf.xlu1  ;;  %v1552_v16 = vpop.trf.xlu0 }
 0x4ea   : > { %2388 = vmatmul.mubr.msk.f32.vlgmr.msra.gmra.mrb[0].mxu0 %vm348_vm0, %v1552_v16  ;;  %2412 = vmatmul.mubr.msk.f32.vlgmr.msra.gmra.mrb[0].mxu1 %vm348_vm0, %v1584_v3 }
 0x4ed   : > { %v1585_v26 = vpop.trf.xlu1  ;;  %v1553_v19 = vpop.trf.xlu0 }
 0x4ee   : > { %2390 = vmatprep.mubr.msk.f32.mxu0 %vm348_vm0, %v1553_v19  ;;  %2414 = vmatprep.mubr.msk.f32.mxu1 %vm348_vm0, %v1585_v26 }
 0x4f1   : > { %v1586_v25 = vpop.trf.xlu1  ;;  %v1554_v63 = vpop.trf.xlu0 }
 0x4f2   : > { %2391 = vmatmul.mubr.msk.f32.gmra.mrb[2].mxu0 %vm348_vm0, %v1554_v63  ;;  %2415 = vmatmul.mubr.msk.f32.gmra.mrb[2].mxu1 %vm348_vm0, %v1586_v25 }
 0x4f5   : > { %v1587_v36 = vpop.trf.xlu1  ;;  %v1555_v22 = vpop.trf.xlu0 }
 0x4f6   : > { %2393 = vmatprep.mubr.msk.f32.mxu0 %vm348_vm0, %v1555_v22  ;;  %2417 = vmatprep.mubr.msk.f32.mxu1 %vm348_vm0, %v1587_v36 }
 0x4f9   : > { %v1588_v21 = vpop.trf.xlu1  ;;  %v1556_v8 = vpop.trf.xlu0 }
 0x4fa   : > { %2394 = vmatmul.mubr.msk.f32.gmra.mrb[4].mxu0 %vm348_vm0, %v1556_v8  ;;  %2418 = vmatmul.mubr.msk.f32.gmra.mrb[4].mxu1 %vm348_vm0, %v1588_v21 }
 0x4fd   : > { %v1589_v7 = vpop.trf.xlu1  ;;  %v1557_v14 = vpop.trf.xlu0 }
 0x4fe   : > { %2396 = vmatprep.mubr.msk.f32.mxu0 %vm348_vm0, %v1557_v14  ;;  %2420 = vmatprep.mubr.msk.f32.mxu1 %vm348_vm0, %v1589_v7 }
 0x501   : > { %v1590_v50 = vpop.trf.xlu1  ;;  %v1558_v35 = vpop.trf.xlu0 }
 0x502   : > { %2397 = vmatmul.mubr.msk.f32.gmra.mrb[6].mxu0 %vm348_vm0, %v1558_v35  ;;  %2421 = vmatmul.mubr.msk.f32.gmra.mrb[6].mxu1 %vm348_vm0, %v1590_v50 }
 0x505   : > { %v1591_v42 = vpop.trf.xlu1  ;;  %v1559_v2 = vpop.trf.xlu0 }
 0x506   : > { %2399 = vmatprep.mubr.msk.f32.mxu0 %vm348_vm0, %v1559_v2  ;;  %2423 = vmatprep.mubr.msk.f32.mxu1 %vm348_vm0, %v1591_v42 }
 0x509   : > { %v1592_v6 = vpop.trf.xlu1  ;;  %v1560_v20 = vpop.trf.xlu0 }
 0x50a   : > { %2400 = vmatmul.mubr.msk.f32.gmra.mrb[8].mxu0 %vm348_vm0, %v1560_v20  ;;  %2424 = vmatmul.mubr.msk.f32.gmra.mrb[8].mxu1 %vm348_vm0, %v1592_v6 }
 0x50d   : > { %v1593_v59 = vpop.trf.xlu1  ;;  %v1561_v23 = vpop.trf.xlu0 }
 0x50e   : > { %2402 = vmatprep.mubr.msk.f32.mxu0 %vm348_vm0, %v1561_v23  ;;  %2426 = vmatprep.mubr.msk.f32.mxu1 %vm348_vm0, %v1593_v59 }
 0x511   : > { %v1594_v27 = vpop.trf.xlu1  ;;  %v1562_v4 = vpop.trf.xlu0 }
 0x512   : > { %2403 = vmatmul.mubr.msk.f32.gmra.mrb[10].mxu0 %vm348_vm0, %v1562_v4  ;;  %2427 = vmatmul.mubr.msk.f32.gmra.mrb[10].mxu1 %vm348_vm0, %v1594_v27 }
 0x515   : > { %v1595_v24 = vpop.trf.xlu1  ;;  %v1563_v10 = vpop.trf.xlu0 }
 0x516   : > { %2405 = vmatprep.mubr.msk.f32.mxu0 %vm348_vm0, %v1563_v10  ;;  %2429 = vmatprep.mubr.msk.f32.mxu1 %vm348_vm0, %v1595_v24 }
 0x519   : > { %v1596_v17 = vpop.trf.xlu1  ;;  %v1564_v46 = vpop.trf.xlu0 }
 0x51a   : > { %2406 = vmatmul.mubr.msk.f32.gmra.mrb[12].mxu0 %vm348_vm0, %v1564_v46  ;;  %2430 = vmatmul.mubr.msk.f32.gmra.mrb[12].mxu1 %vm348_vm0, %v1596_v17 }
 0x51d   : > { %v1597_v5 = vpop.trf.xlu1  ;;  %v1565_v30 = vpop.trf.xlu0 }
 0x51e   : > { %2408 = vmatprep.mubr.msk.f32.mxu0 %vm348_vm0, %v1565_v30  ;;  %2432 = vmatprep.mubr.msk.f32.mxu1 %vm348_vm0, %v1597_v5 }
 0x521   : > { %v1598_v9 = vpop.trf.xlu1  ;;  %v1566_v0 = vpop.trf.xlu0 }
 0x522   : > { %2409 = vmatmul.mubr.msk.f32.gmra.mrb[14].mxu0 %vm348_vm0, %v1566_v0  ;;  %2433 = vmatmul.mubr.msk.f32.gmra.mrb[14].mxu1 %vm348_vm0, %v1598_v9 }
 0x5bd   : > { %v2389_v49 = vpop.f32.mrb[0].mxu0  ;;  %v2413_v61 = vpop.f32.mrb[0].mxu1 }
 0x5be   : > { %v1767_v41 = vadd.f32 %v2389_v49, %v3881_v1  ;;  %v1847_v31 = vadd.f32 %v2413_v61, %v3881_v1  ;;  %v1761_v39 = vpop.f32.mrb[1].mxu0  ;;  %v1841_v54 = vpop.f32.mrb[1].mxu1 }
 0x5bf   : > { %v1762_v37 = vadd.f32 %v3881_v1, %v1761_v39  ;;  %v1842_v29 = vadd.f32 %v3881_v1, %v1841_v54 }
 0x5c0   : > { %1921 = vst.msk [vmem:[%s2946_s10 + $0x8] sm:$0xff] %vm348_vm0, %v1767_v41  ;;  %1937 = vst.msk [vmem:[%s2946_s10 + $0x88] sm:$0xff] %vm348_vm0, %v1847_v31 }
 0x5c1   : > { %1920 = vst.msk [vmem:[%s2946_s10] sm:$0xff] %vm348_vm0, %v1762_v37  ;;  %1936 = vst.msk [vmem:[%s2946_s10 + $0x80] sm:$0xff] %vm348_vm0, %v1842_v29 }
 0x5c5   : > { %v2392_v34 = vpop.f32.mrb[2].mxu0  ;;  %v2416_v57 = vpop.f32.mrb[2].mxu1 }
 0x5c6   : > { %v1777_v56 = vadd.f32 %v2392_v34, %v3881_v1  ;;  %v1857_v12 = vadd.f32 %v2416_v57, %v3881_v1  ;;  %v1771_v13 = vpop.f32.mrb[3].mxu0  ;;  %v1851_v51 = vpop.f32.mrb[3].mxu1 }
 0x5c7   : > { %v1772_v47 = vadd.f32 %v3881_v1, %v1771_v13  ;;  %v1852_v28 = vadd.f32 %v3881_v1, %v1851_v51 }
 0x5c8   : > { %1923 = vst.msk [vmem:[%s2946_s10 + $0x18] sm:$0xff] %vm348_vm0, %v1777_v56  ;;  %1939 = vst.msk [vmem:[%s2946_s10 + $0x98] sm:$0xff] %vm348_vm0, %v1857_v12 }
 0x5c9   : > { %1922 = vst.msk [vmem:[%s2946_s10 + $0x10] sm:$0xff] %vm348_vm0, %v1772_v47  ;;  %1938 = vst.msk [vmem:[%s2946_s10 + $0x90] sm:$0xff] %vm348_vm0, %v1852_v28 }
 0x5cd   : > { %v2395_v58 = vpop.f32.mrb[4].mxu0  ;;  %v2419_v33 = vpop.f32.mrb[4].mxu1 }
 0x5ce   : > { %v1787_v62 = vadd.f32 %v2395_v58, %v3881_v1  ;;  %v1867_v43 = vadd.f32 %v2419_v33, %v3881_v1  ;;  %v1781_v32 = vpop.f32.mrb[5].mxu0  ;;  %v1861_v48 = vpop.f32.mrb[5].mxu1 }
 0x5cf   : > { %v1782_v18 = vadd.f32 %v3881_v1, %v1781_v32  ;;  %v1862_v45 = vadd.f32 %v3881_v1, %v1861_v48 }
 0x5d0   : > { %1925 = vst.msk [vmem:[%s2946_s10 + $0x28] sm:$0xff] %vm348_vm0, %v1787_v62  ;;  %1941 = vst.msk [vmem:[%s2946_s10 + $0xa8] sm:$0xff] %vm348_vm0, %v1867_v43 }
 0x5d1   : > { %1924 = vst.msk [vmem:[%s2946_s10 + $0x20] sm:$0xff] %vm348_vm0, %v1782_v18  ;;  %1940 = vst.msk [vmem:[%s2946_s10 + $0xa0] sm:$0xff] %vm348_vm0, %v1862_v45 }
 0x5d5   : > { %v2398_v38 = vpop.f32.mrb[6].mxu0  ;;  %v2422_v15 = vpop.f32.mrb[6].mxu1 }
 0x5d6   : > { %v1797_v55 = vadd.f32 %v2398_v38, %v3881_v1  ;;  %v1877_v11 = vadd.f32 %v2422_v15, %v3881_v1  ;;  %v1791_v60 = vpop.f32.mrb[7].mxu0  ;;  %v1871_v53 = vpop.f32.mrb[7].mxu1 }
 0x5d7   : > { %v1792_v44 = vadd.f32 %v3881_v1, %v1791_v60  ;;  %v1872_v40 = vadd.f32 %v3881_v1, %v1871_v53 }
 0x5d8   : > { %1927 = vst.msk [vmem:[%s2946_s10 + $0x38] sm:$0xff] %vm348_vm0, %v1797_v55  ;;  %1943 = vst.msk [vmem:[%s2946_s10 + $0xb8] sm:$0xff] %vm348_vm0, %v1877_v11 }
 0x5d9   : > { %1926 = vst.msk [vmem:[%s2946_s10 + $0x30] sm:$0xff] %vm348_vm0, %v1792_v44  ;;  %1942 = vst.msk [vmem:[%s2946_s10 + $0xb0] sm:$0xff] %vm348_vm0, %v1872_v40 }
 0x5dd   : > { %v2401_v52 = vpop.f32.mrb[8].mxu0  ;;  %v2425_v3 = vpop.f32.mrb[8].mxu1 }
 0x5de   : > { %v1807_v16 = vadd.f32 %v2401_v52, %v3881_v1  ;;  %v1887_v26 = vadd.f32 %v2425_v3, %v3881_v1  ;;  %v1801_v19 = vpop.f32.mrb[9].mxu0  ;;  %v1881_v25 = vpop.f32.mrb[9].mxu1 }
 0x5df   : > { %v1802_v63 = vadd.f32 %v3881_v1, %v1801_v19  ;;  %v1882_v36 = vadd.f32 %v3881_v1, %v1881_v25 }
 0x5e0   : > { %1929 = vst.msk [vmem:[%s2946_s10 + $0x48] sm:$0xff] %vm348_vm0, %v1807_v16  ;;  %1945 = vst.msk [vmem:[%s2946_s10 + $0xc8] sm:$0xff] %vm348_vm0, %v1887_v26 }
 0x5e1   : > { %1928 = vst.msk [vmem:[%s2946_s10 + $0x40] sm:$0xff] %vm348_vm0, %v1802_v63  ;;  %1944 = vst.msk [vmem:[%s2946_s10 + $0xc0] sm:$0xff] %vm348_vm0, %v1882_v36 }
 0x5e5   : > { %v2404_v22 = vpop.f32.mrb[10].mxu0  ;;  %v2428_v21 = vpop.f32.mrb[10].mxu1 }
 0x5e6   : > { %v1817_v8 = vadd.f32 %v2404_v22, %v3881_v1  ;;  %v1897_v7 = vadd.f32 %v2428_v21, %v3881_v1  ;;  %v1811_v14 = vpop.f32.mrb[11].mxu0  ;;  %v1891_v50 = vpop.f32.mrb[11].mxu1 }
 0x5e7   : > { %v1812_v35 = vadd.f32 %v3881_v1, %v1811_v14  ;;  %v1892_v42 = vadd.f32 %v3881_v1, %v1891_v50 }
 0x5e8   : > { %1931 = vst.msk [vmem:[%s2946_s10 + $0x58] sm:$0xff] %vm348_vm0, %v1817_v8  ;;  %1947 = vst.msk [vmem:[%s2946_s10 + $0xd8] sm:$0xff] %vm348_vm0, %v1897_v7 }
 0x5e9   : > { %1930 = vst.msk [vmem:[%s2946_s10 + $0x50] sm:$0xff] %vm348_vm0, %v1812_v35  ;;  %1946 = vst.msk [vmem:[%s2946_s10 + $0xd0] sm:$0xff] %vm348_vm0, %v1892_v42 }
 0x5ed   : > { %v2407_v2 = vpop.f32.mrb[12].mxu0  ;;  %v2431_v6 = vpop.f32.mrb[12].mxu1 }
 0x5ee   : > { %v1827_v20 = vadd.f32 %v2407_v2, %v3881_v1  ;;  %v1907_v59 = vadd.f32 %v2431_v6, %v3881_v1  ;;  %v1821_v23 = vpop.f32.mrb[13].mxu0  ;;  %v1901_v27 = vpop.f32.mrb[13].mxu1 }
 0x5ef   : > { %v1822_v4 = vadd.f32 %v3881_v1, %v1821_v23  ;;  %v1902_v24 = vadd.f32 %v3881_v1, %v1901_v27 }
 0x5f0   : > { %1933 = vst.msk [vmem:[%s2946_s10 + $0x68] sm:$0xff] %vm348_vm0, %v1827_v20  ;;  %1949 = vst.msk [vmem:[%s2946_s10 + $0xe8] sm:$0xff] %vm348_vm0, %v1907_v59 }
 0x5f1   : > { %1932 = vst.msk [vmem:[%s2946_s10 + $0x60] sm:$0xff] %vm348_vm0, %v1822_v4  ;;  %1948 = vst.msk [vmem:[%s2946_s10 + $0xe0] sm:$0xff] %vm348_vm0, %v1902_v24 }
 0x5f5   : > { %v2410_v10 = vpop.f32.mrb[14].mxu0  ;;  %v2434_v17 = vpop.f32.mrb[14].mxu1 }
 0x5f6   : > { %v1837_v46 = vadd.f32 %v2410_v10, %v3881_v1  ;;  %v1917_v5 = vadd.f32 %v2434_v17, %v3881_v1  ;;  %v1831_v30 = vpop.f32.mrb[15].mxu0  ;;  %v1911_v9 = vpop.f32.mrb[15].mxu1 }
 0x5f7   : > { %v1832_v0 = vadd.f32 %v3881_v1, %v1831_v30  ;;  %v1912_v49 = vadd.f32 %v3881_v1, %v1911_v9 }
 0x5f8   : > { %1935 = vst.msk [vmem:[%s2946_s10 + $0x78] sm:$0xff] %vm348_vm0, %v1837_v46  ;;  %1951 = vst.msk [vmem:[%s2946_s10 + $0xf8] sm:$0xff] %vm348_vm0, %v1917_v5 }
 0x5f9   : > { %1934 = vst.msk [vmem:[%s2946_s10 + $0x70] sm:$0xff] %vm348_vm0, %v1832_v0  ;;  %1950 = vst.msk [vmem:[%s2946_s10 + $0xf0] sm:$0xff] %vm348_vm0, %v1912_v49 }
 0x5fa PF: > { %s16_s25 = sadd.s32 1, %s2867_s25   ;;  %s4153_s21 = smov %s2859_s23 }
 0x5fb   : > { %p13_p8 = scmp.ge.s32.totalorder %s16_s25, 10   ;;  %s4154_s22 = smov %s2863_s24 }
 0x5fc   : > { %s4155_s23 = smov %s4158_s26  ;;  %s4156_s24 = smov %s4162_s27 }
 0x5fd   :  { %15 = sbr.rel (!%p13_p8) target bundleno = 3 (0x3), region = 88 }

</bundles_post_ra>
